<compile_context>
chip_gen: v7x
topology: tpu7x:2x2x1
jax: 0.10.0
libtpu: 0.0.40
codegen_flags: <defaults>
</compile_context>

<pallas_src>
import functools
import math

import jax
import jax.numpy as jnp
from jax import lax
from jax.experimental import pallas as pl
from jax.experimental.pallas import tpu as pltpu


_VMEM_BUDGET = 12 * 1024 * 1024   # working-set target: fits v5e/v6e/v7x scoped VMEM
_VMEM_LIMIT = 32 * 1024 * 1024    # explicit limit: raises v5e's 16 MiB, <= v7x default


def _pick_batch_block(N, per_sample_bytes, budget_bytes):
    """Samples per grid step: largest divisor of N that fits the (double-
    buffered) VMEM budget while keeping >= min(4, N) grid steps so the
    BlockSpec pipeline overlaps DMA/compute and both v7x TensorCores get work."""
    divisors = [d for d in range(1, N + 1) if N % d == 0]
    fits = [d for d in divisors if d * per_sample_bytes <= budget_bytes]
    if not fits:
        return 1
    min_steps = min(4, N)
    pipelined = [d for d in fits if N // d >= min_steps]
    return max(pipelined) if pipelined else min(fits)


def _make_kernel(bn, Cr, Cor, pad_r, hw_eff, hwo_eff, precision):
    def kernel(x_ref, s_ref, o_ref):
        # x_ref: (bn, Cr, hw_eff)   s_ref: (hw_eff, hwo_eff)   o_ref: (bn, Cor, hwo_eff)
        x = x_ref[...].reshape(bn * Cr, hw_eff)          # flat M for one big MXU matmul
        sel = jnp.dot(x, s_ref[...],
                      preferred_element_type=jnp.float32,
                      precision=precision)
        sel = sel.astype(o_ref.dtype).reshape(bn, Cr, hwo_eff)
        if pad_r:
            zpad = jnp.zeros((bn, pad_r, hwo_eff), o_ref.dtype)
            o_ref[:, :pad_r, :] = zpad                   # leading zero-pad channels
            o_ref[:, pad_r + Cr:, :] = zpad              # trailing zero-pad channels
        o_ref[:, pad_r:pad_r + Cr, :] = sel              # data channels, one store
    return kernel


def lambda_layer(x, planes):
    """Pallas implementation of the ResNet option-A shortcut lambda:
       F.pad(x[:, :, ::2, ::2], (0,0,0,0, planes//4, planes//4), 'constant', 0)."""
    N, C, H, W = x.shape
    pad = planes // 4
    C_out = C + 2 * pad
    H_out, W_out = (H + 1) // 2, (W + 1) // 2            # matches PyTorch ::2
    hw, hwo = H * W, H_out * W_out

    # Lane-density packing: if the output spatial slab is narrower than one
    # 128-lane vreg, pack `pack` consecutive channels per row (block-diagonal
    # selection matrix) so both the output stores and the MXU N-dim are
    # lane-dense.  `pack` must divide C and pad so pad rows stay whole rows.
    pack = 1
    if hwo < 128:
        g = math.gcd(C, pad) if pad > 0 else C
        max_pack = min(max(1, 128 // hwo), 8, g)
        for p_ in range(1, max_pack + 1):
            if g % p_ == 0:
                pack = p_
    Cr, Cor, pad_r = C // pack, C_out // pack, pad // pack
    hw_eff, hwo_eff = pack * hw, pack * hwo

    # One combined 0/1 selection matrix (constant under jit, exact).
    f = jnp.arange(hw)
    q = jnp.arange(hwo)
    s = (((f // W)[:, None] == 2 * (q // W_out)[None, :])
         & ((f % W)[:, None] == 2 * (q % W_out)[None, :])).astype(x.dtype)
    if pack > 1:
        s = jnp.kron(jnp.eye(pack, dtype=x.dtype), s)    # block-diagonal

    # Precision gating: a single bf16 MXU pass is exact for 0/1 x bf16 data;
    # wider dtypes (f32, f16) need HIGHEST to stay bit-exact.
    precision = (lax.Precision.DEFAULT if x.dtype == jnp.bfloat16
                 else lax.Precision.HIGHEST)

    # VMEM budget per sample: double-buffered input + output blocks, plus the
    # f32 matmul result and a possible reshape copy; selection matrix resident.
    itemsize = x.dtype.itemsize
    per_sample = (2 * (C * hw + C_out * hwo) * itemsize
                  + C * hw * itemsize
                  + C * hwo * 4)
    budget = _VMEM_BUDGET - 2 * hw_eff * hwo_eff * itemsize
    bn = _pick_batch_block(N, per_sample, budget)

    x3 = x.reshape(N, Cr, hw_eff)                        # free row-major reshape
    out3 = pl.pallas_call(
        _make_kernel(bn, Cr, Cor, pad_r, hw_eff, hwo_eff, precision),
        out_shape=jax.ShapeDtypeStruct((N, Cor, hwo_eff), x.dtype),
        grid=(N // bn,),
        in_specs=[
            pl.BlockSpec((bn, Cr, hw_eff), lambda i: (i, 0, 0)),
            pl.BlockSpec((hw_eff, hwo_eff), lambda i: (0, 0)),   # resident, fetched once
        ],
        out_specs=pl.BlockSpec((bn, Cor, hwo_eff), lambda i: (i, 0, 0)),
        compiler_params=pltpu.CompilerParams(
            dimension_semantics=("parallel",),
            vmem_limit_bytes=_VMEM_LIMIT),
    )(x3, s)
    return out3.reshape(N, C_out, H_out, W_out)


if __name__ == "__main__":
    key = jax.random.PRNGKey(0)
    N, C, H, W = 2, 4, 16, 16
    planes = 8   # output channels of the shortcut's conv path (pad = planes//4 per side)

    x = jax.random.normal(key, (N, C, H, W), dtype=jnp.float32)

    fn = jax.jit(functools.partial(lambda_layer, planes=planes))
    out = jax.block_until_ready(fn(x))

    # Pure-JAX reference of the PyTorch lambda semantics.
    pad = planes // 4
    ref = jnp.pad(x[:, :, ::2, ::2], ((0, 0), (pad, pad), (0, 0), (0, 0)))
    assert out.shape == ref.shape, (out.shape, ref.shape)
    assert jnp.allclose(out, ref, atol=1e-6), float(jnp.max(jnp.abs(out - ref)))

    print("KERNEL_OK")
</pallas_src>

<mosaic_0001>
module attributes {stable_mosaic.version = 11 : i64} {
  func.func @kernel(%arg0: i32, %arg1: memref<1x2x512xf32, #tpu.memory_space<vmem>>, %arg2: memref<512x128xf32, #tpu.memory_space<vmem>>, %arg3: memref<1x4x128xf32, #tpu.memory_space<vmem>>) attributes {dimension_semantics = [#tpu.dimension_semantics<parallel>], iteration_bounds = array<i64: 2>, scalar_prefetch = 0 : i64, scratch_operands = 0 : i64, tpu.core_type = #tpu.core_type<tc>, window_params = [{transform_indices = @transform_0, window_bounds = array<i64: 1, 2, 512>}, {pipeline_mode = #tpu.pipeline_mode<synchronous>, transform_indices = @transform_1, window_bounds = array<i64: 512, 128>}, {transform_indices = @transform_2, window_bounds = array<i64: 1, 4, 128>}]} {
    %c0 = arith.constant 0 : index
    %c0_0 = arith.constant 0 : index
    %c0_1 = arith.constant 0 : index
    %0 = vector.load %arg1[%c0, %c0_0, %c0_1] : memref<1x2x512xf32, #tpu.memory_space<vmem>>, vector<1x2x512xf32>
    %1 = vector.shape_cast %0 : vector<1x2x512xf32> to vector<2x512xf32>
    %c0_2 = arith.constant 0 : index
    %c0_3 = arith.constant 0 : index
    %2 = vector.load %arg2[%c0_2, %c0_3] : memref<512x128xf32, #tpu.memory_space<vmem>>, vector<512x128xf32>
    %cst = arith.constant dense<0.000000e+00> : vector<2x128xf32>
    %3 = tpu.matmul %1, %2, %cst {dimension_numbers = #tpu.dot_dimension_numbers<[1], [0], [0], [1], [0, 0, 1, 1], [], []>, precision = #tpu.contract_precision<fp32>} : vector<2x512xf32>, vector<512x128xf32>, vector<2x128xf32> -> vector<2x128xf32>
    %4 = vector.shape_cast %3 : vector<2x128xf32> to vector<1x2x128xf32>
    %cst_4 = arith.constant 0.000000e+00 : f32
    %5 = vector.broadcast %cst_4 : f32 to vector<1x1x128xf32>
    %c0_5 = arith.constant 0 : index
    %c0_6 = arith.constant 0 : index
    %c0_7 = arith.constant 0 : index
    %6 = vector.load %arg3[%c0_5, %c0_6, %c0_7] : memref<1x4x128xf32, #tpu.memory_space<vmem>>, vector<1x1x128xf32>
    tpu.vector_store %arg3[%c0_5, %c0_6, %c0_7], %5 {strides = array<i32>} : memref<1x4x128xf32, #tpu.memory_space<vmem>>, vector<1x1x128xf32>,
    %c0_8 = arith.constant 0 : index
    %c3 = arith.constant 3 : index
    %c0_9 = arith.constant 0 : index
    %7 = vector.load %arg3[%c0_8, %c3, %c0_9] : memref<1x4x128xf32, #tpu.memory_space<vmem>>, vector<1x1x128xf32>
    tpu.vector_store %arg3[%c0_8, %c3, %c0_9], %5 {strides = array<i32>} : memref<1x4x128xf32, #tpu.memory_space<vmem>>, vector<1x1x128xf32>,
    %c0_10 = arith.constant 0 : index
    %c1 = arith.constant 1 : index
    %c0_11 = arith.constant 0 : index
    %8 = vector.load %arg3[%c0_10, %c1, %c0_11] : memref<1x4x128xf32, #tpu.memory_space<vmem>>, vector<1x2x128xf32>
    tpu.vector_store %arg3[%c0_10, %c1, %c0_11], %4 {strides = array<i32>} : memref<1x4x128xf32, #tpu.memory_space<vmem>>, vector<1x2x128xf32>,
    return
  }
  func.func @transform_0(%arg0: i32) -> (i32, i32, i32) {
    %c0_i32 = arith.constant 0 : i32
    %c0_i32_0 = arith.constant 0 : i32
    %c0_i32_1 = arith.constant 0 : i32
    return %arg0, %c0_i32, %c0_i32_0 : i32, i32, i32
  }
  func.func @transform_1(%arg0: i32) -> (i32, i32) {
    %c0_i32 = arith.constant 0 : i32
    %c0_i32_0 = arith.constant 0 : i32
    %c0_i32_1 = arith.constant 0 : i32
    return %c0_i32, %c0_i32_0 : i32, i32
  }
  func.func @transform_2(%arg0: i32) -> (i32, i32, i32) {
    %c0_i32 = arith.constant 0 : i32
    %c0_i32_0 = arith.constant 0 : i32
    %c0_i32_1 = arith.constant 0 : i32
    return %arg0, %c0_i32, %c0_i32_0 : i32, i32, i32
  }
}

</mosaic_0001>

<bundles_post_ra>
// kernel: lambda_layer.1
= control target key start
LH: loop header
LB: loop body
LE: loop exit
PB: predicated region body
PF: predicated region fallthrough
CT: control target
= control target key end

     0   :  { %s2860_s9 = smov 0   ;;  %s4244_s0 = inlined_call_operand.vmem [shape: f32[2,2,512], index: 0, kind: input, shape index: {}]   ;;  %s4245_s1 = inlined_call_operand.vmem [shape: f32[512,128], index: 1, kind: input, shape index: {}]   ;;  %s4246_s2 = inlined_call_operand.vmem [shape: f32[2,4,128], index: 2, kind: output, shape index: {}]  }
   0x1 LB: > { %s2009_s10 = sadd.s32 4294967295, %s2841_s9   ;;  %p2013_p0 = scmp.ge.s32.totalorder %s2841_s9, 1  ;;  %s2841_s9 = sphi %s2860_s9, %s12_s9  }
   0x2   : > { %p112_p1 = scmp.lt.s32.totalorder %s2841_s9, 3 }
   0x4   : > { %p113_p2 = pnand %p2013_p0, %p112_p1 }
   0x6   : > { %116 = sbr.rel (%p113_p2) target bundleno = 465 (0x1d1), region = 28 }
   0xd   : > { %v159_v0 = vld [vmem:[%s4245_s1 + $0x80] sm:$0xff]  ;;  %v160_v1 = vld [vmem:[%s4245_s1 + $0x88] sm:$0xff]  ;;  %v161_v7 = vld [vmem:[%s4245_s1 + $0x90] sm:$0xff]  ;;  %v2843_v29 = vmov 1983009808   ;;  %p3099_p3 = scmp.lt.s32.totalorder %s2009_s10, 1 }
   0xe   : > { %v143_v2 = vld [vmem:[%s4245_s1] sm:$0xff]  ;;  %v278_v3 = vand.u32 4294901760, %v159_v0  ;;  %v281_v4 = vand.u32 4294901760, %v160_v1  ;;  %v144_v5 = vld [vmem:[%s4245_s1 + $0x8] sm:$0xff]  ;;  %v162_v8 = vld [vmem:[%s4245_s1 + $0x98] sm:$0xff]  ;;  %v284_v10 = vand.u32 4294901760, %v161_v7  ;;  %v2921_v30 = vunpack.c.l.s4 %v2843_v29 }
   0xf   : > { %v230_v6 = vand.u32 4294901760, %v143_v2  ;;  %v233_v9 = vand.u32 4294901760, %v144_v5  ;;  %v287_v11 = vand.u32 4294901760, %v162_v8  ;;  %v145_v12 = vld [vmem:[%s4245_s1 + $0x10] sm:$0xff]  ;;  %v146_v13 = vld [vmem:[%s4245_s1 + $0x18] sm:$0xff]  ;;  %v163_v18 = vld [vmem:[%s4245_s1 + $0xa0] sm:$0xff] }
  0x10   : > { %v2892_v14 = vpack.c.bf16 %v281_v4, %v278_v3  ;;  %v236_v16 = vand.u32 4294901760, %v145_v12  ;;  %v239_v17 = vand.u32 4294901760, %v146_v13  ;;  %v164_v19 = vld [vmem:[%s4245_s1 + $0xa8] sm:$0xff]  ;;  %v147_v23 = vld [vmem:[%s4245_s1 + $0x20] sm:$0xff]  ;;  %v2915_v26 = vsub.f32 %v161_v7, %v284_v10  ;;  %v165_v39 = vld [vmem:[%s4245_s1 + $0xb0] sm:$0xff]  ;;  %s4627_s10 = smov (!%p3099_p3, %s2009_s10), 1 }
  0x11   : > { %v2894_v15 = vsub.f32 %v143_v2, %v230_v6  ;;  %v2902_v20 = vpack.c.bf16 %v233_v9, %v230_v6  ;;  %v2904_v21 = vsub.f32 %v144_v5, %v233_v9  ;;  %v2906_v22 = vpack.c.bf16 %v287_v11, %v284_v10  ;;  %v148_v24 = vld [vmem:[%s4245_s1 + $0x28] sm:$0xff]  ;;  %v166_v44 = vld [vmem:[%s4245_s1 + $0xb8] sm:$0xff]  ;;  %v149_v57 = vld [vmem:[%s4245_s1 + $0x30] sm:$0xff]  ;;  %s2019_s24 = sshll.u32 %s4627_s10, 3  ;;  %s2016_s14 = sshll.u32 %s4627_s10, 2 }
  0x12   : > { %2441 = vmatprep.subr.bf16.mxu0 %v2892_v14  ;;  %v2917_v27 = vsub.f32 %v162_v8, %v287_v11  ;;  %v2919_v28 = vpack.c.bf16 %v239_v17, %v236_v16  ;;  %v290_v31 = vand.u32 4294901760, %v163_v18  ;;  %v293_v32 = vand.u32 4294901760, %v164_v19  ;;  %v150_v58 = vld [vmem:[%s4245_s1 + $0x38] sm:$0xff]  ;;  %v167_v7 = vld [vmem:[%s4245_s1 + $0xc0] sm:$0xff]  ;;  %v168_v8 = vld [vmem:[%s4245_s1 + $0xc8] sm:$0xff]  ;;  %s137_s27 = scalar_lea.vmem %s4244_s0, %s2019_s24  ;;  %s4236_s17 = scalar_lea.vmem %s4246_s2, %s2016_s14 }
  0x13   : > { %2443 = vmatpush3.bf16.msra.mxu0 %v2902_v20  ;;  %v2924_v33 = vsub.f32 %v159_v0, %v278_v3  ;;  %v2926_v34 = vsub.f32 %v160_v1, %v281_v4  ;;  %v242_v35 = vand.u32 4294901760, %v147_v23  ;;  %v245_v36 = vand.u32 4294901760, %v148_v24 }
  0x14   : > { %2445 = vmatprep.subr.bf16.mxu0 %v2906_v22  ;;  %v4262_v37 = vand.u32 4294901760, %v2894_v15  ;;  %v4261_v38 = vand.u32 4294901760, %v2904_v21  ;;  %v2934_v40 = vsub.f32 %v145_v12, %v236_v16  ;;  %v2936_v41 = vsub.f32 %v146_v13, %v239_v17  ;;  %v151_v13 = vld [vmem:[%s4245_s1 + $0x40] sm:$0xff] }
  0x15   : > { %v2938_v42 = vpack.c.bf16 %v293_v32, %v290_v31  ;;  %v4265_v43 = vand.u32 4294901760, %v2924_v33  ;;  %v2944_v45 = vsub.f32 %v163_v18, %v290_v31  ;;  %v2946_v46 = vsub.f32 %v164_v19, %v293_v32  ;;  %v152_v32 = vld [vmem:[%s4245_s1 + $0x48] sm:$0xff] }
  0x16   : > { %v4263_v47 = vand.u32 4294901760, %v2926_v34  ;;  %v2949_v48 = vpack.c.bf16 %v245_v36, %v242_v35  ;;  %v345_v50 = vsub.f32 %v2894_v15, %v4262_v37  ;;  %v352_v51 = vsub.f32 %v2904_v21, %v4261_v38 }
  0x17   : > { %2447 = vmatpush3.bf16.msra.mxu0 %v2919_v28  ;;  %v457_v49 = vsub.f32 %v2924_v33, %v4265_v43  ;;  %v296_v52 = vand.u32 4294901760, %v165_v39  ;;  %v299_v54 = vand.u32 4294901760, %v166_v44  ;;  %v4258_v55 = vand.u32 4294901760, %v2915_v26 }
  0x18   : > { %2449 = vmatprep.subr.bf16.mxu0 %v2938_v42  ;;  %v464_v53 = vsub.f32 %v2926_v34, %v4263_v47  ;;  %v4257_v56 = vand.u32 4294901760, %v2917_v27  ;;  %v2973_v60 = vsub.f32 %v147_v23, %v242_v35  ;;  %v346_v61 = vand.u32 4294901760, %v345_v50 }
  0x19   : > { %v458_v59 = vand.u32 4294901760, %v457_v49  ;;  %v353_v62 = vand.u32 4294901760, %v352_v51  ;;  %v2975_v0 = vsub.f32 %v148_v24, %v245_v36  ;;  %v2977_v1 = vpack.c.bf16 %v299_v54, %v296_v52 }
  0x1a   : > { %v465_v63 = vand.u32 4294901760, %v464_v53  ;;  %v471_v2 = vsub.f32 %v2915_v26, %v4258_v55  ;;  %v478_v4 = vsub.f32 %v2917_v27, %v4257_v56  ;;  %v248_v5 = vand.u32 4294901760, %v149_v57 }
  0x1b   : > { %2451 = vmatpush3.bf16.msra.mxu0 %v2949_v48  ;;  %v2474_v3 = vpack.c.bf16 %v353_v62, %v346_v61  ;;  %v251_v6 = vand.u32 4294901760, %v150_v58  ;;  %v4256_v11 = vand.u32 4294901760, %v2934_v40  ;;  %v4255_v12 = vand.u32 4294901760, %v2936_v41  ;;  %v170_v62 = vld [vmem:[%s4245_s1 + $0xd8] sm:$0xff] }
  0x1c   : > { %v2472_v9 = vpack.c.bf16 %v465_v63, %v458_v59  ;;  %2453 = vmatprep.subr.bf16.mxu0 %v2977_v1  ;;  %v472_v10 = vand.u32 4294901760, %v471_v2  ;;  %v2998_v16 = vsub.f32 %v165_v39, %v296_v52  ;;  %v3000_v17 = vsub.f32 %v166_v44, %v299_v54 }
  0x1d   : > { %v479_v18 = vand.u32 4294901760, %v478_v4  ;;  %v3002_v19 = vpack.c.bf16 %v251_v6, %v248_v5  ;;  %v359_v23 = vsub.f32 %v2934_v40, %v4256_v11  ;;  %v366_v24 = vsub.f32 %v2936_v41, %v4255_v12  ;;  %v153_v4 = vld [vmem:[%s4245_s1 + $0x50] sm:$0xff] }
  0x1e   : > { %2473 = vmatprep.subr.bf16.mxu1 %v2472_v9  ;;  %v302_v29 = vand.u32 4294901760, %v167_v7  ;;  %v305_v31 = vand.u32 4294901760, %v168_v8  ;;  %v4252_v36 = vand.u32 4294901760, %v2944_v45  ;;  %v4251_v39 = vand.u32 4294901760, %v2946_v46 }
  0x1f   : > { %2475 = vmatpush3.bf16.msra.mxu1 %v2474_v3  ;;  %v2476_v35 = vpack.c.bf16 %v479_v18, %v472_v10  ;;  %2455 = vmatpush3.bf16.msra.mxu0 %v3002_v19  ;;  %v254_v44 = vand.u32 4294901760, %v151_v13  ;;  %v3016_v49 = vsub.f32 %v149_v57, %v248_v5  ;;  %v360_v50 = vand.u32 4294901760, %v359_v23  ;;  %v169_v57 = vld [vmem:[%s4245_s1 + $0xd0] sm:$0xff] }
  0x20   : > { %v367_v51 = vand.u32 4294901760, %v366_v24  ;;  %v3018_v52 = vpack.c.bf16 %v305_v31, %v302_v29  ;;  %v3020_v53 = vsub.f32 %v150_v58, %v251_v6  ;;  %v485_v54 = vsub.f32 %v2944_v45, %v4252_v36 }
  0x21   : > { %2477 = vmatprep.subr.bf16.mxu1 %v2476_v35  ;;  %v492_v59 = vsub.f32 %v2946_v46, %v4251_v39  ;;  %v257_v61 = vand.u32 4294901760, %v152_v32  ;;  %v3035_v58 = vsub.f32 %v167_v7, %v302_v29  ;;  %v4248_v2 = vand.u32 4294901760, %v2973_v60 }
  0x22   : > { %v2478_v63 = vpack.c.bf16 %v367_v51, %v360_v50  ;;  %2457 = vmatprep.subr.bf16.mxu0 %v3018_v52  ;;  %v4247_v3 = vand.u32 4294901760, %v2975_v0  ;;  %v3042_v5 = vsub.f32 %v168_v8, %v305_v31  ;;  %v486_v6 = vand.u32 4294901760, %v485_v54  ;;  %v154_v8 = vld [vmem:[%s4245_s1 + $0x58] sm:$0xff] }
  0x23   : > { %v493_v9 = vand.u32 4294901760, %v492_v59  ;;  %v3044_v10 = vpack.c.bf16 %v257_v61, %v254_v44  ;;  %v373_v7 = vsub.f32 %v2973_v60, %v4248_v2  ;;  %v308_v23 = vand.u32 4294901760, %v169_v57 }
  0x24   : > { %2479 = vmatpush3.bf16.msra.mxu1 %v2478_v63  ;;  %v380_v18 = vsub.f32 %v2975_v0, %v4247_v3  ;;  %v311_v24 = vand.u32 4294901760, %v170_v62  ;;  %v4250_v31 = vand.u32 4294901760, %v2998_v16  ;;  %v4249_v35 = vand.u32 4294901760, %v3000_v17 }
  0x25   : > { %v2480_v29 = vpack.c.bf16 %v493_v9, %v486_v6  ;;  %2459 = vmatpush3.bf16.msra.mxu0 %v3044_v10  ;;  %v260_v50 = vand.u32 4294901760, %v153_v4  ;;  %v3058_v51 = vsub.f32 %v151_v13, %v254_v44  ;;  %v374_v54 = vand.u32 4294901760, %v373_v7  ;;  %v171_v13 = vld [vmem:[%s4245_s1 + $0xe0] sm:$0xff]  ;;  %v172_v44 = vld [vmem:[%s4245_s1 + $0xe8] sm:$0xff] }
  0x26   : > { %v381_v59 = vand.u32 4294901760, %v380_v18  ;;  %v3060_v63 = vpack.c.bf16 %v311_v24, %v308_v23  ;;  %v3062_v3 = vsub.f32 %v152_v32, %v257_v61  ;;  %v499_v6 = vsub.f32 %v2998_v16, %v4250_v31 }
  0x27   : > { %2481 = vmatprep.subr.bf16.mxu1 %v2480_v29  ;;  %v506_v9 = vsub.f32 %v3000_v17, %v4249_v35  ;;  %v263_v2 = vand.u32 4294901760, %v154_v8  ;;  %v3077_v32 = vsub.f32 %v169_v57, %v308_v23  ;;  %v4254_v61 = vand.u32 4294901760, %v3016_v49  ;;  %v155_v29 = vld [vmem:[%s4245_s1 + $0x60] sm:$0xff] }
  0x28   : > { %v2482_v7 = vpack.c.bf16 %v381_v59, %v374_v54  ;;  %2461 = vmatprep.subr.bf16.mxu0 %v3060_v63  ;;  %v4253_v18 = vand.u32 4294901760, %v3020_v53  ;;  %v3084_v35 = vsub.f32 %v170_v62, %v311_v24  ;;  %v500_v31 = vand.u32 4294901760, %v499_v6  ;;  %v156_v62 = vld [vmem:[%s4245_s1 + $0x68] sm:$0xff] }
  0x29   : > { %v507_v39 = vand.u32 4294901760, %v506_v9  ;;  %v3086_v36 = vpack.c.bf16 %v263_v2, %v260_v50  ;;  %v387_v57 = vsub.f32 %v3016_v49, %v4254_v61  ;;  %v314_v54 = vand.u32 4294901760, %v171_v13 }
  0x2a   : > { %2483 = vmatpush3.bf16.msra.mxu1 %v2482_v7  ;;  %v394_v23 = vsub.f32 %v3020_v53, %v4253_v18  ;;  %v317_v59 = vand.u32 4294901760, %v172_v44  ;;  %v4260_v6 = vand.u32 4294901760, %v3035_v58  ;;  %v4259_v9 = vand.u32 4294901760, %v3042_v5 }
  0x2b   : > { %4348 = vst [vmem:[#allocation2_spill] sm:$0xff] %v3086_v36  ;;  %v2484_v24 = vpack.c.bf16 %v507_v39, %v500_v31  ;;  %2463 = vmatpush3.bf16.msra.mxu0 %v3086_v36  ;;  %v266_v7 = vand.u32 4294901760, %v155_v29  ;;  %v3106_v18 = vsub.f32 %v153_v4, %v260_v50  ;;  %v388_v61 = vand.u32 4294901760, %v387_v57  ;;  %v173_v4 = vld [vmem:[%s4245_s1 + $0xf0] sm:$0xff]  ;;  %v174_v50 = vld [vmem:[%s4245_s1 + $0xf8] sm:$0xff] }
  0x2c   : > { %v395_v12 = vand.u32 4294901760, %v394_v23  ;;  %v3108_v11 = vpack.c.bf16 %v317_v59, %v314_v54  ;;  %v3110_v56 = vsub.f32 %v154_v8, %v263_v2  ;;  %v513_v39 = vsub.f32 %v3035_v58, %v4260_v6 }
  0x2d   : > { %2485 = vmatprep.subr.bf16.mxu1 %v2484_v24  ;;  %v520_v31 = vsub.f32 %v3042_v5, %v4259_v9  ;;  %v269_v55 = vand.u32 4294901760, %v156_v62  ;;  %v3125_v2 = vsub.f32 %v171_v13, %v314_v54  ;;  %v4264_v8 = vand.u32 4294901760, %v3058_v51  ;;  %v157_v24 = vld [vmem:[%s4245_s1 + $0x70] sm:$0xff] }
  0x2e   : > { %4350 = vst [vmem:[#allocation3_spill] sm:$0xff] %v3108_v11  ;;  %v2486_v57 = vpack.c.bf16 %v395_v12, %v388_v61  ;;  %2465 = vmatprep.subr.bf16.mxu0 %v3108_v11  ;;  %v4266_v23 = vand.u32 4294901760, %v3062_v3  ;;  %v3138_v9 = vsub.f32 %v172_v44, %v317_v59  ;;  %v514_v6 = vand.u32 4294901760, %v513_v39  ;;  %v158_v44 = vld [vmem:[%s4245_s1 + $0x78] sm:$0xff] }
  0x2f   : > { %v521_v12 = vand.u32 4294901760, %v520_v31  ;;  %v3140_v61 = vpack.c.bf16 %v269_v55, %v266_v7  ;;  %v401_v13 = vsub.f32 %v3058_v51, %v4264_v8  ;;  %v320_v38 = vand.u32 4294901760, %v173_v4 }
  0x30   : > { %2487 = vmatpush3.bf16.msra.mxu1 %v2486_v57  ;;  %v408_v54 = vsub.f32 %v3062_v3, %v4266_v23  ;;  %v323_v37 = vand.u32 4294901760, %v174_v50  ;;  %v4275_v39 = vand.u32 4294901760, %v3077_v32  ;;  %v4271_v31 = vand.u32 4294901760, %v3084_v35 }
  0x31   : > { %4351 = vst [vmem:[#allocation4_spill] sm:$0xff] %v3140_v61  ;;  %v2488_v59 = vpack.c.bf16 %v521_v12, %v514_v6  ;;  %2467 = vmatpush3.bf16.msra.mxu0 %v3140_v61  ;;  %v272_v57 = vand.u32 4294901760, %v157_v24  ;;  %v3154_v47 = vsub.f32 %v155_v29, %v266_v7  ;;  %v402_v8 = vand.u32 4294901760, %v401_v13 }
  0x32   : > { %v409_v43 = vand.u32 4294901760, %v408_v54  ;;  %v3156_v25 = vpack.c.bf16 %v323_v37, %v320_v38  ;;  %v3159_v23 = vsub.f32 %v156_v62, %v269_v55  ;;  %v527_v6 = vsub.f32 %v3077_v32, %v4275_v39 }
  0x33   : > { %2489 = vmatprep.subr.bf16.mxu1 %v2488_v59  ;;  %v534_v12 = vsub.f32 %v3084_v35, %v4271_v31  ;;  %v275_v61 = vand.u32 4294901760, %v158_v44  ;;  %v3168_v29 = vsub.f32 %v173_v4, %v320_v38  ;;  %v4272_v7 = vand.u32 4294901760, %v3106_v18  ;;  %v3192_v31 = vld [vmem:[%s137_s27] sm:$0xff] }
  0x34   : > { %4352 = vst [vmem:[#allocation5_spill] sm:$0xff] %v3156_v25  ;;  %v2490_v11 = vpack.c.bf16 %v409_v43, %v402_v8  ;;  %2469 = vmatprep.subr.bf16.mxu0 %v3156_v25  ;;  %v4273_v13 = vand.u32 4294901760, %v3110_v56  ;;  %v3172_v55 = vsub.f32 %v174_v50, %v323_v37  ;;  %v528_v62 = vand.u32 4294901760, %v527_v6  ;;  %4357 = vst [vmem:[#allocation9_spill] sm:$0xff] %v3192_v31 }
  0x35   : > { %4353 = vst [vmem:[#allocation6_spill] sm:$0xff] %v3168_v29  ;;  %v535_v54 = vand.u32 4294901760, %v534_v12  ;;  %v3174_v59 = vpack.c.bf16 %v275_v61, %v272_v57  ;;  %v3179_v43 = vsub.f32 %v157_v24, %v272_v57  ;;  %v415_v38 = vsub.f32 %v3106_v18, %v4272_v7 }
  0x36   : > { %4354 = vst [vmem:[#allocation7_spill] sm:$0xff] %v3172_v55  ;;  %2491 = vmatpush3.bf16.msra.mxu1 %v2490_v11  ;;  %v422_v37 = vsub.f32 %v3110_v56, %v4273_v13  ;;  %v211_v4 = vunpack.c.0.s8 %v2921_v30  ;;  %v4356_v8 = vlaneseq  ;;  %v4274_v12 = vand.u32 4294901760, %v3125_v2 }
  0x37   : > { %4355 = vst [vmem:[#allocation8_spill] sm:$0xff] %v3174_v59  ;;  %v2492_v50 = vpack.c.bf16 %v535_v54, %v528_v62  ;;  %2471 = vmatpush3.bf16.msra.mxu0 %v3174_v59  ;;  %v4276_v11 = vand.u32 4294901760, %v3138_v9  ;;  %v416_v24 = vand.u32 4294901760, %v415_v38  ;;  %v2504_v7 = vpack.c.bf16 %v2926_v34, %v2924_v33 }
  0x38   : > { %v213_v6 = vshrl.u32 %v4356_v8, 7  ;;  %v423_v57 = vand.u32 4294901760, %v422_v37  ;;  %v4277_v13 = vand.u32 4294901760, %v3154_v47  ;;  %v541_v62 = vsub.f32 %v3125_v2, %v4274_v12 }
  0x39   : > { %2493 = vmatprep.subr.bf16.mxu1 %v2492_v50  ;;  %v548_v54 = vsub.f32 %v3138_v9, %v4276_v11  ;;  %v4285_v38 = vand.u32 4294901760, %v3159_v23  ;;  %v3206_v37 = vsub.f32 %v158_v44, %v275_v61  ;;  %2505 = vmatprep.subr.bf16.mxu0 %v2504_v7  ;;  %v561_v7 = vand.u32 4294901760, %v3172_v55 }
  0x3a   : > { %v3197_v30 = vsub.s32 %v211_v4, %v213_v6  ;;  %v2494_v8 = vpack.c.bf16 %v423_v57, %v416_v24  ;;  %v429_v50 = vsub.f32 %v3154_v47, %v4277_v13  ;;  %v554_v4 = vand.u32 4294901760, %v3168_v29 }
  0x3b   : > { %v542_v12 = vand.u32 4294901760, %v541_v62  ;;  %v549_v39 = vand.u32 4294901760, %v548_v54  ;;  %v436_v11 = vsub.f32 %v3159_v23, %v4285_v38  ;;  %v442_v62 = vand.u32 4294901760, %v3179_v43 }
  0x3c   : > { %4358 = vst [vmem:[#allocation10_spill] sm:$0xff] %v3197_v30  ;;  %v215_v6 = vrot.slane %v3192_v31, %v3197_v30  ;;  %2495 = vmatpush3.bf16.msra.mxu1 %v2494_v8  ;;  %v430_v61 = vand.u32 4294901760, %v429_v50  ;;  %v555_v44 = vsub.f32 %v3168_v29, %v554_v4  ;;  %v562_v30 = vsub.f32 %v3172_v55, %v561_v7 }
  0x3d   : > { %v2496_v13 = vpack.c.bf16 %v549_v39, %v542_v12  ;;  %v437_v59 = vand.u32 4294901760, %v436_v11  ;;  %v449_v54 = vand.u32 4294901760, %v3206_v37  ;;  %v443_v29 = vsub.f32 %v3179_v43, %v442_v62 }
  0x3e   : > { %v223_v24 = vcombine.high %v215_v6, %v215_v6  ;;  %v3219_v57 = vand.u32 4294901760, %v215_v6  ;;  %v556_v25 = vand.u32 4294901760, %v555_v44  ;;  %v563_v38 = vand.u32 4294901760, %v562_v30 }
  0x3f   : > { %2497 = vmatprep.subr.bf16.mxu1 %v2496_v13  ;;  %v2498_v50 = vpack.c.bf16 %v437_v59, %v430_v61  ;;  %v450_v39 = vsub.f32 %v3206_v37, %v449_v54  ;;  %v444_v55 = vand.u32 4294901760, %v443_v29  ;;  %v2506_v61 = vpack.c.bf16 %v2904_v21, %v2894_v15 }
  0x40   : > { %4359 = vst [vmem:[#allocation11_spill] sm:$0xff] %v3219_v57  ;;  %v3224_v31 = vand.u32 4294901760, %v223_v24  ;;  %v3227_v8 = vsub.f32 %v215_v6, %v3219_v57  ;;  %v2500_v44 = vpack.c.bf16 %v563_v38, %v556_v25  ;;  %v4361_v25 = vand.u32 4294901760, %v2924_v33 }
  0x41   : > { %2499 = vmatpush3.bf16.msra.mxu1 %v2498_v50  ;;  %v451_v36 = vand.u32 4294901760, %v450_v39  ;;  %v4362_v29 = vand.u32 4294901760, %v2926_v34  ;;  %v4363_v39 = vand.u32 4294901760, %v2894_v15  ;;  %v4367_v33 = vand.u32 4294901760, %v2934_v40 }
  0x42   : > { %4360 = vst [vmem:[#allocation12_spill] sm:$0xff] %v3224_v31  ;;  %v326_v12 = vsub.f32 %v223_v24, %v3224_v31  ;;  %v4290_v11 = vand.u32 4294901760, %v3227_v8  ;;  %566 = vmatprep.mubr.f32.mxu1 %v3224_v31  ;;  %2501 = vmatprep.subr.bf16.mxu1 %v2500_v44  ;;  %v2508_v24 = vpack.c.bf16 %v2917_v27, %v2915_v26  ;;  %v4364_v44 = vand.u32 4294901760, %v2904_v21 }
  0x43   : > { %v2502_v30 = vpack.c.bf16 %v451_v36, %v444_v55  ;;  %v3245_v38 = vpack.c.bf16 %v4362_v29, %v4361_v25  ;;  %v4365_v55 = vand.u32 4294901760, %v2915_v26  ;;  %v4368_v34 = vand.u32 4294901760, %v2936_v41 }
  0x44   : > { %v327_v13 = vand.u32 4294901760, %v326_v12  ;;  %v334_v59 = vsub.f32 %v3227_v8, %v4290_v11  ;;  %v3251_v36 = vpack.c.bf16 %v4364_v44, %v4363_v39  ;;  %v4366_v11 = vand.u32 4294901760, %v2917_v27 }
  0x45   : > { %2503 = vmatpush3.bf16.msra.mxu1 %v2502_v30  ;;  %v3264_v30 = vpack.c.bf16 %v4368_v34, %v4367_v33  ;;  %v4369_v15 = vand.u32 4294901760, %v2944_v45  ;;  %v4370_v21 = vand.u32 4294901760, %v2946_v46  ;;  %v4371_v26 = vand.u32 4294901760, %v2973_v60 }
  0x46   : > { %v328_v6 = vsub.f32 %v326_v12, %v327_v13  ;;  %v335_v50 = vand.u32 4294901760, %v334_v59  ;;  %v3257_v31 = vpack.c.bf16 %v4366_v11, %v4365_v55  ;;  %2537 = vmatprep.subr.bf16.mxu1 %v2892_v14  ;;  %v4372_v27 = vand.u32 4294901760, %v2975_v0 }
  0x47   : > { %v3270_v25 = vpack.c.bf16 %v4370_v21, %v4369_v15  ;;  %v4375_v29 = vand.u32 4294901760, %v3000_v17  ;;  %v4376_v44 = vand.u32 4294901760, %v3016_v49  ;;  %v4377_v55 = vand.u32 4294901760, %v3020_v53 }
  0x48   : > { %v329_v59 = vand.u32 4294901760, %v328_v6  ;;  %v3276_v11 = vpack.c.bf16 %v4372_v27, %v4371_v26  ;;  %v4374_v6 = vand.u32 4294901760, %v2998_v16  ;;  %v4378_v34 = vand.u32 4294901760, %v3035_v58  ;;  %568 = vmatmul.mubr.f32.vlgmr.msra.gmra.mrb[0].mxu1 %v3219_v57 }
  0x49   : > { %v3288_v33 = vpack.c.bf16 %v4377_v55, %v4376_v44  ;;  %v4379_v15 = vand.u32 4294901760, %v3042_v5  ;;  %v4381_v26 = vand.u32 4294901760, %v3058_v51  ;;  %v4382_v27 = vand.u32 4294901760, %v3062_v3  ;;  %2539 = vmatpush3.bf16.msra.mxu1 %v2902_v20  ;;  %810 = vmatprep.mubr.f32.mxu1 %v327_v13  ;;  %v3401_v13 = vld [vmem:[%s4245_s1 + $0x198] sm:$0xff] }
  0x4a   : > { %4373 = vst [vmem:[#allocation13_spill] sm:$0xff] %v3276_v11  ;;  %v3282_v39 = vpack.c.bf16 %v4375_v29, %v4374_v6  ;;  %330 = vmatprep.mubr.f32.mxu0 %v329_v59  ;;  %v4383_v6 = vand.u32 4294901760, %v3077_v32  ;;  %v4384_v29 = vand.u32 4294901760, %v3084_v35  ;;  %v4386_v55 = vand.u32 4294901760, %v3106_v18  ;;  %2541 = vmatprep.subr.bf16.mxu1 %v2906_v22 }
  0x4b   : > { %v3294_v21 = vpack.c.bf16 %v4379_v15, %v4378_v34  ;;  %v3300_v11 = vpack.c.bf16 %v4382_v27, %v4381_v26  ;;  %v4387_v34 = vand.u32 4294901760, %v3110_v56  ;;  %v4389_v26 = vand.u32 4294901760, %v3138_v9  ;;  %336 = vmatmul.mubr.f32.vlgmr.msra.gmra.mrb[0].mxu0 %v335_v50 }
  0x4c   : > { %v3307_v44 = vpack.c.bf16 %v4384_v29, %v4383_v6  ;;  %v4390_v59 = vand.u32 4294901760, %v3154_v47  ;;  %v4391_v6 = vand.u32 4294901760, %v3159_v23  ;;  %v3328_v57 = vpack.c.bf16 %v561_v7, %v554_v4  ;;  %2507 = vmatpush3.bf16.msra.mxu0 %v2506_v61  ;;  %703 = vmatprep.mubr.f32.mxu0 %v326_v12 }
  0x4d   : > { %4380 = vst [vmem:[#allocation14_spill] sm:$0xff] %v3294_v21  ;;  %v3313_v15 = vpack.c.bf16 %v4387_v34, %v4386_v55  ;;  %v4388_v21 = vand.u32 4294901760, %v3125_v2  ;;  %v2510_v55 = vpack.c.bf16 %v2936_v41, %v2934_v40  ;;  %2509 = vmatprep.subr.bf16.mxu0 %v2508_v24  ;;  %v2512_v50 = vpack.c.bf16 %v2946_v46, %v2944_v45 }
  0x4e   : > { %4385 = vst [vmem:[#allocation15_spill] sm:$0xff] %v3307_v44  ;;  %v3326_v29 = vpack.c.bf16 %v4391_v6, %v4390_v59  ;;  %v3330_v44 = vpack.c.bf16 %v449_v54, %v442_v62  ;;  %2543 = vmatpush3.bf16.msra.mxu1 %v2919_v28  ;;  %v2514_v4 = vpack.c.bf16 %v2975_v0, %v2973_v60  ;;  %v3356_v60 = vld [vmem:[%s4245_s1 + $0x180] sm:$0xff]  ;;  %v192_v0 = vld [vmem:[%s4245_s1 + $0x188] sm:$0xff]  ;;  %v4399_v59 = vld [vmem:[#allocation5_spill] sm:$0xff]  ;;  %v4295_v6 = vand.u32 4294901760, %v3401_v13 }
  0x4f   : > { %v3319_v27 = vpack.c.bf16 %v4389_v26, %v4388_v21  ;;  %2545 = vmatprep.subr.bf16.mxu1 %v2938_v42  ;;  %v2516_v40 = vpack.c.bf16 %v3000_v17, %v2998_v16  ;;  %v2518_v41 = vpack.c.bf16 %v3020_v53, %v3016_v49  ;;  %v2520_v45 = vpack.c.bf16 %v3042_v5, %v3035_v58  ;;  %v3368_v53 = vld [vmem:[%s4245_s1 + $0x100] sm:$0xff]  ;;  %v3373_v58 = vld [vmem:[%s4245_s1 + $0x108] sm:$0xff] }
  0x50   : > { %2511 = vmatpush3.bf16.msra.mxu0 %v2510_v55  ;;  %v2522_v46 = vpack.c.bf16 %v3062_v3, %v3058_v51  ;;  %v2524_v16 = vpack.c.bf16 %v3084_v35, %v3077_v32  ;;  %v1140_v17 = vand.u32 4294901760, %v3356_v60  ;;  %v1143_v49 = vand.u32 4294901760, %v192_v0  ;;  %v4392_v32 = vld [vmem:[#allocation2_spill] sm:$0xff]  ;;  %v4396_v54 = vld [vmem:[#allocation7_spill] sm:$0xff]  ;;  %v3420_v55 = vld [vmem:[%s4245_s1 + $0x110] sm:$0xff] }
  0x51   : > { %2513 = vmatprep.subr.bf16.mxu0 %v2512_v50  ;;  %v2526_v3 = vpack.c.bf16 %v3110_v56, %v3106_v18  ;;  %v2528_v5 = vpack.c.bf16 %v3138_v9, %v3125_v2  ;;  %v1092_v35 = vand.u32 4294901760, %v3368_v53  ;;  %v1095_v51 = vand.u32 4294901760, %v3373_v58  ;;  %v3391_v56 = vld [vmem:[%s4245_s1 + $0x190] sm:$0xff]  ;;  %v4394_v9 = vld [vmem:[#allocation3_spill] sm:$0xff]  ;;  %v4395_v2 = vld [vmem:[#allocation6_spill] sm:$0xff] }
  0x52   : > { %2547 = vmatpush3.bf16.msra.mxu1 %v2949_v48  ;;  %v3384_v7 = vsub.f32 %v3356_v60, %v1140_v17  ;;  %v3386_v62 = vsub.f32 %v192_v0, %v1143_v49  ;;  %4393 = vst [vmem:[#allocation2_spill] sm:$0xff] %v3391_v56  ;;  %v2530_v18 = vpack.c.bf16 %v3159_v23, %v3154_v47  ;;  %4397 = vst [vmem:[#allocation3_spill] sm:$0xff] %v3401_v13  ;;  %v4398_v47 = vld [vmem:[#allocation4_spill] sm:$0xff]  ;;  %v3425_v50 = vld [vmem:[%s4245_s1 + $0x118] sm:$0xff] }
  0x53   : > { %2549 = vmatprep.subr.bf16.mxu1 %v2977_v1  ;;  %v2532_v12 = vpack.c.bf16 %v4396_v54, %v4395_v2  ;;  %v3404_v61 = vsub.f32 %v3368_v53, %v1092_v35  ;;  %v3407_v24 = vsub.f32 %v3373_v58, %v1095_v51  ;;  %v4296_v21 = vand.u32 4294901760, %v3391_v56  ;;  %4400 = vst [vmem:[#allocation6_spill] sm:$0xff] %v3420_v55  ;;  %v4406_v60 = vld [vmem:[#allocation8_spill] sm:$0xff]  ;;  %v4408_v2 = vld [vmem:[#allocation9_spill] sm:$0xff] }
  0x54   : > { %2515 = vmatpush3.bf16.msra.mxu0 %v2514_v4  ;;  %v4298_v23 = vand.u32 4294901760, %v3384_v7  ;;  %v4297_v34 = vand.u32 4294901760, %v3386_v62  ;;  %v2534_v26 = vpack.c.bf16 %v3206_v37, %v3179_v43  ;;  %4401 = vst [vmem:[#allocation7_spill] sm:$0xff] %v3425_v50  ;;  %v3430_v4 = vld [vmem:[%s4245_s1 + $0x1a0] sm:$0xff]  ;;  %v3440_v37 = vld [vmem:[%s4245_s1 + $0x1a8] sm:$0xff]  ;;  %v4305_v0 = vand.u32 4294901760, %v3420_v55 }
  0x55   : > { %2517 = vmatprep.subr.bf16.mxu0 %v2516_v40  ;;  %4402 = vst [vmem:[#allocation4_spill] sm:$0xff] %v3430_v4  ;;  %v3435_v43 = vsub.f32 %v3391_v56, %v4296_v21  ;;  %4403 = vst [vmem:[#allocation5_spill] sm:$0xff] %v3440_v37  ;;  %v3445_v40 = vld [vmem:[%s4245_s1 + $0x120] sm:$0xff]  ;;  %v3466_v58 = vsub.f32 %v3401_v13, %v4295_v6  ;;  %v4409_v6 = vand.u32 4294901760, %v3227_v8 }
  0x56   : > { %2551 = vmatpush3.bf16.msra.mxu1 %v3002_v19  ;;  %4404 = vst [vmem:[#allocation16_spill] sm:$0xff] %v3445_v40  ;;  %v1326_v53 = vsub.f32 %v3386_v62, %v4297_v34  ;;  %v3483_v21 = vpack.c.bf16 %v1143_v49, %v1140_v17  ;;  %v3502_v17 = vsub.f32 %v3420_v55, %v4305_v0 }
  0x57   : > { %2553 = vmatprep.subr.bf16.mxu1 %v3018_v52  ;;  %v4307_v54 = vand.u32 4294901760, %v3435_v43 }
  0x58   : > { %2519 = vmatpush3.bf16.msra.mxu0 %v2518_v41  ;;  %v3450_v41 = vld [vmem:[%s4245_s1 + $0x128] sm:$0xff] }
  0x59   : > { %2521 = vmatprep.subr.bf16.mxu0 %v2520_v45  ;;  %4405 = vst [vmem:[#allocation17_spill] sm:$0xff] %v3450_v41  ;;  %v4300_v45 = vand.u32 4294901760, %v3404_v61 }
  0x5a   : > { %2555 = vmatpush3.bf16.msra.mxu1 %v3044_v10 }
  0x5b   : > { %2557 = vmatprep.subr.bf16.mxu1 %v3060_v63  ;;  %v1207_v34 = vsub.f32 %v3404_v61, %v4300_v45  ;;  %v3508_v45 = vld [vmem:[%s4245_s1 + $0x130] sm:$0xff] }
  0x5c   : > { %2523 = vmatpush3.bf16.msra.mxu0 %v2522_v46  ;;  %v4299_v46 = vand.u32 4294901760, %v3407_v24  ;;  %4411 = vst [vmem:[#allocation18_spill] sm:$0xff] %v3508_v45 }
  0x5d   : > { %2525 = vmatprep.subr.bf16.mxu0 %v2524_v16  ;;  %v1319_v16 = vsub.f32 %v3384_v7, %v4298_v23 }
  0x5e   : > { %2559 = vmatpush3.bf16.msra.mxu1 %v4392_v32  ;;  %v1214_v23 = vsub.f32 %v3407_v24, %v4299_v46 }
  0x5f   : > { %2561 = vmatprep.subr.bf16.mxu1 %v4394_v9  ;;  %v1320_v49 = vand.u32 4294901760, %v1319_v16 }
  0x60   : > { %2527 = vmatpush3.bf16.msra.mxu0 %v2526_v3  ;;  %v4302_v3 = vand.u32 4294901760, %v3425_v50  ;;  %v1215_v0 = vand.u32 4294901760, %v1214_v23 }
  0x61   : > { %2529 = vmatprep.subr.bf16.mxu0 %v2528_v5  ;;  %v4301_v5 = vand.u32 4294901760, %v3430_v4 }
  0x62   : > { %2563 = vmatpush3.bf16.msra.mxu1 %v4398_v47 }
  0x63   : > { %2565 = vmatprep.subr.bf16.mxu1 %v4399_v59  ;;  %v3522_v16 = vsub.f32 %v3430_v4, %v4301_v5 }
  0x64   : > { %2531 = vmatpush3.bf16.msra.mxu0 %v2530_v18  ;;  %v3473_v18 = vld [vmem:[%s4245_s1 + $0x1b0] sm:$0xff] }
  0x65   : > { %2533 = vmatprep.subr.bf16.mxu0 %v2532_v12  ;;  %4407 = vst [vmem:[#allocation8_spill] sm:$0xff] %v3473_v18  ;;  %v4304_v12 = vand.u32 4294901760, %v3445_v40 }
  0x66   : > { %2567 = vmatpush3.bf16.msra.mxu1 %v4406_v60 }
  0x67   : > { %2601 = vmatprep.subr.bf16.mxu1 %v2892_v14  ;;  %v4303_v14 = vand.u32 4294901760, %v3440_v37 }
  0x68   : > { %2535 = vmatpush3.bf16.msra.mxu0 %v2534_v26  ;;  %v4306_v26 = vand.u32 4294901760, %v3450_v41 }
  0x69   : > { %2569 = vmatprep.subr.bf16.mxu0 %v3245_v38  ;;  %814 = vmatmul.mubr.f32.vlgmr.msra.gmra.mrb[2].mxu1 %v4409_v6  ;;  %v3494_v38 = vld [vmem:[%s4245_s1 + $0x1b8] sm:$0xff]  ;;  %v1327_v6 = vand.u32 4294901760, %v1326_v53  ;;  %v3568_v53 = vld [vmem:[%s4245_s1 + $0x140] sm:$0xff] }
  0x6a   : > { %4410 = vst [vmem:[#allocation9_spill] sm:$0xff] %v3494_v38  ;;  %2603 = vmatpush3.bf16.msra.mxu1 %v2902_v20  ;;  %v3517_v20 = vsub.f32 %v3425_v50, %v4302_v3  ;;  %v3545_v5 = vsub.f32 %v3450_v41, %v4306_v26  ;;  %v3562_v26 = vsub.f32 %v3435_v43, %v4307_v54  ;;  %4417 = vst [vmem:[#allocation22_spill] sm:$0xff] %v3568_v53  ;;  %v3583_v3 = vld [vmem:[%s4245_s1 + $0x148] sm:$0xff] }
  0x6b   : > { %706 = vmatmul.mubr.f32.vlgmr.msra.gmra.mrb[2].mxu0 %v3227_v8  ;;  %2605 = vmatprep.subr.bf16.mxu1 %v2906_v22  ;;  %v3512_v8 = vpack.c.bf16 %v1095_v51, %v1092_v35  ;;  %v4414_v22 = vld [vmem:[#allocation12_spill] sm:$0xff]  ;;  %v3535_v35 = vsub.f32 %v3440_v37, %v4303_v14  ;;  %v3540_v51 = vsub.f32 %v3445_v40, %v4304_v12  ;;  %v3556_v14 = vld [vmem:[%s4245_s1 + $0x1c8] sm:$0xff]  ;;  %v1208_v12 = vand.u32 4294901760, %v1207_v34 }
  0x6c   : > { %2571 = vmatpush3.bf16.msra.mxu0 %v3251_v36  ;;  %v3528_v36 = vld [vmem:[%s4245_s1 + $0x138] sm:$0xff]  ;;  %980 = vmatprep.mubr.f32.mxu0 %v4414_v22  ;;  %4416 = vst [vmem:[#allocation21_spill] sm:$0xff] %v3556_v14  ;;  %v3571_v46 = vpack.c.bf16 %v1327_v6, %v1320_v49  ;;  %4419 = vst [vmem:[#allocation23_spill] sm:$0xff] %v3583_v3  ;;  %v4421_v34 = vand.u32 4294901760, %v3494_v38  ;;  %v4429_v6 = vld [vmem:[#allocation10_spill] sm:$0xff] }
  0x6d   : > { %4412 = vst [vmem:[#allocation19_spill] sm:$0xff] %v3512_v8  ;;  %4413 = vst [vmem:[#allocation20_spill] sm:$0xff] %v3528_v36  ;;  %2573 = vmatprep.subr.bf16.mxu0 %v3257_v31  ;;  %v3551_v31 = vld [vmem:[%s4245_s1 + $0x1c0] sm:$0xff]  ;;  %1084 = vmatprep.mubr.f32.mxu1 %v4414_v22  ;;  %v4418_v22 = vand.u32 4294901760, %v3473_v18  ;;  %v3604_v41 = vpack.c.bf16 %v1215_v0, %v1208_v12  ;;  %v4440_v12 = vand.u32 4294901760, %v3568_v53  ;;  %v3713_v8 = vld [vmem:[%s4245_s1 + $0x168] sm:$0xff] }
  0x6e   : > { %4415 = vst [vmem:[#allocation12_spill] sm:$0xff] %v3551_v31  ;;  %2607 = vmatpush3.bf16.msra.mxu1 %v2919_v28  ;;  %v4420_v28 = vand.u32 4294901760, %v3466_v58  ;;  %v4449_v40 = vand.u32 4294901760, %v3540_v51 }
  0x6f   : > { %v3576_v23 = vsub.f32 %v3473_v18, %v4418_v22  ;;  %2609 = vmatprep.subr.bf16.mxu1 %v2938_v42  ;;  %v3599_v18 = vsub.f32 %v3494_v38, %v4421_v34  ;;  %4423 = vst [vmem:[#allocation25_spill] sm:$0xff] %v3604_v41  ;;  %v4424_v22 = vand.u32 4294901760, %v3508_v45  ;;  %v4426_v34 = vand.u32 4294901760, %v3528_v36  ;;  %v3736_v41 = vld [vmem:[%s4245_s1 + $0x170] sm:$0xff] }
  0x70   : > { %2575 = vmatpush3.bf16.msra.mxu0 %v3264_v30  ;;  %v3590_v49 = vsub.f32 %v3466_v58, %v4420_v28  ;;  %v4427_v28 = vand.u32 4294901760, %v3502_v17  ;;  %v4433_v30 = vand.u32 4294901760, %v3517_v20  ;;  %v3729_v4 = vsub.f32 %v3540_v51, %v4449_v40 }
  0x71   : > { %2577 = vmatprep.subr.bf16.mxu0 %v3270_v25  ;;  %4422 = vst [vmem:[#allocation24_spill] sm:$0xff] %v3599_v18  ;;  %v3610_v54 = vsub.f32 %v3508_v45, %v4424_v22  ;;  %v3617_v42 = vsub.f32 %v3528_v36, %v4426_v34  ;;  %v3628_v22 = vld [vmem:[%s4245_s1 + $0x1d0] sm:$0xff]  ;;  %v4430_v34 = vcombine.high %v4408_v2, %v4408_v2  ;;  %v4434_v45 = vand.u32 4294901760, %v3551_v31 }
  0x72   : > { %2611 = vmatpush3.bf16.msra.mxu1 %v2949_v48  ;;  %v3622_v0 = vsub.f32 %v3502_v17, %v4427_v28  ;;  %v3633_v48 = vld [vmem:[%s4245_s1 + $0x1d8] sm:$0xff]  ;;  %v3647_v36 = vsub.f32 %v3517_v20, %v4433_v30  ;;  %v4435_v2 = vand.u32 4294901760, %v3556_v14  ;;  %4450 = vst [vmem:[#allocation36_spill] sm:$0xff] %v3729_v4  ;;  %v4453_v40 = vand.u32 4294901760, %v3628_v22 }
  0x73   : > { %4425 = vst [vmem:[#allocation26_spill] sm:$0xff] %v3610_v54  ;;  %4428 = vst [vmem:[#allocation27_spill] sm:$0xff] %v3633_v48  ;;  %v3639_v25 = vrot.slane %v4430_v34, %v4429_v6  ;;  %v4432_v28 = vld [vmem:[#allocation13_spill] sm:$0xff]  ;;  %2613 = vmatprep.subr.bf16.mxu1 %v2977_v1  ;;  %v3652_v38 = vsub.f32 %v3551_v31, %v4434_v45  ;;  %v3662_v1 = vld [vmem:[%s4245_s1 + $0x150] sm:$0xff]  ;;  %v4438_v45 = vand.u32 4294901760, %v3522_v16 }
  0x74   : > { %2579 = vmatpush3.bf16.msra.mxu0 %v4432_v28  ;;  %v3657_v6 = vsub.f32 %v3556_v14, %v4435_v2  ;;  %v3667_v30 = vld [vmem:[%s4245_s1 + $0x158] sm:$0xff]  ;;  %v4439_v28 = vand.u32 4294901760, %v3535_v35  ;;  %v3683_v14 = vsub.f32 %v3568_v53, %v4440_v12  ;;  %v3688_v31 = vld [vmem:[%s4245_s1 + $0x1e0] sm:$0xff]  ;;  %v4445_v12 = vand.u32 4294901760, %v3583_v3 }
  0x75   : > { %4431 = vst [vmem:[#allocation10_spill] sm:$0xff] %v3639_v25  ;;  %4437 = vst [vmem:[#allocation28_spill] sm:$0xff] %v3667_v30  ;;  %2581 = vmatprep.subr.bf16.mxu0 %v3282_v39  ;;  %v3673_v34 = vsub.f32 %v3522_v16, %v4438_v45  ;;  %v3693_v39 = vld [vmem:[%s4245_s1 + $0x1e8] sm:$0xff]  ;;  %v3698_v45 = vld [vmem:[%s4245_s1 + $0x160] sm:$0xff] }
  0x76   : > { %4436 = vst [vmem:[#allocation13_spill] sm:$0xff] %v3657_v6  ;;  %v3678_v2 = vsub.f32 %v3535_v35, %v4439_v28  ;;  %4441 = vst [vmem:[#allocation29_spill] sm:$0xff] %v3683_v14  ;;  %v224_v28 = vcombine.high %v3639_v25, %v3639_v25  ;;  %v3705_v53 = vsub.f32 %v3583_v3, %v4445_v12  ;;  %v3718_v25 = vld [vmem:[%s4245_s1 + $0x1f0] sm:$0xff]  ;;  %v3723_v12 = vld [vmem:[%s4245_s1 + $0x1f8] sm:$0xff]  ;;  %2615 = vmatpush3.bf16.msra.mxu1 %v3002_v19 }
  0x77   : > { %4442 = vst [vmem:[#allocation30_spill] sm:$0xff] %v3688_v31  ;;  %4443 = vst [vmem:[#allocation31_spill] sm:$0xff] %v3693_v39  ;;  %2617 = vmatprep.subr.bf16.mxu1 %v3018_v52  ;;  %v4452_v3 = vld [vmem:[#allocation14_spill] sm:$0xff]  ;;  %v3754_v52 = vld [vmem:[%s4245_s1 + $0x178] sm:$0xff]  ;;  %v3759_v19 = vsub.f32 %v3628_v22, %v4453_v40  ;;  %v4459_v40 = vand.u32 4294901760, %v3667_v30 }
  0x78   : > { %4444 = vst [vmem:[#allocation32_spill] sm:$0xff] %v3698_v45  ;;  %4446 = vst [vmem:[#allocation33_spill] sm:$0xff] %v3705_v53  ;;  %v3738_v50 = vand.u32 4294901760, %v224_v28  ;;  %2583 = vmatpush3.bf16.msra.mxu0 %v3288_v33  ;;  %v4458_v33 = vand.u32 4294901760, %v3662_v1 }
  0x79   : > { %4447 = vst [vmem:[#allocation34_spill] sm:$0xff] %v3718_v25  ;;  %4448 = vst [vmem:[#allocation35_spill] sm:$0xff] %v3723_v12  ;;  %2585 = vmatprep.subr.bf16.mxu0 %v4452_v3  ;;  %v4455_v3 = vand.u32 4294901760, %v3633_v48  ;;  %v3779_v55 = vsub.f32 %v3667_v30, %v4459_v40  ;;  %v4462_v30 = vld [vmem:[#allocation15_spill] sm:$0xff]  ;;  %v4466_v40 = vand.u32 4294901760, %v3723_v12 }
  0x7a   : > { %4451 = vst [vmem:[#allocation37_spill] sm:$0xff] %v3738_v50  ;;  %4454 = vst [vmem:[#allocation14_spill] sm:$0xff] %v3759_v19  ;;  %v3768_v56 = vsub.f32 %v224_v28, %v3738_v50  ;;  %2619 = vmatpush3.bf16.msra.mxu1 %v3044_v10  ;;  %v3774_v37 = vsub.f32 %v3662_v1, %v4458_v33  ;;  %v4460_v10 = vand.u32 4294901760, %v3688_v31  ;;  %v4461_v33 = vand.u32 4294901760, %v3693_v39 }
  0x7b   : > { %v3764_v4 = vsub.f32 %v3633_v48, %v4455_v3  ;;  %2621 = vmatprep.subr.bf16.mxu1 %v3060_v63  ;;  %v4464_v48 = vand.u32 4294901760, %v3713_v8  ;;  %v3816_v3 = vsub.f32 %v3723_v12, %v4466_v40  ;;  %v4475_v12 = vand.u32 4294901760, %v3407_v24 }
  0x7c   : > { %4457 = vst [vmem:[#allocation39_spill] sm:$0xff] %v3768_v56  ;;  %2587 = vmatpush3.bf16.msra.mxu0 %v3300_v11  ;;  %v3788_v28 = vsub.f32 %v3688_v31, %v4460_v10  ;;  %v3793_v13 = vsub.f32 %v3693_v39, %v4461_v33  ;;  %v4463_v11 = vand.u32 4294901760, %v3698_v45  ;;  %v4465_v31 = vand.u32 4294901760, %v3718_v25 }
  0x7d   : > { %4456 = vst [vmem:[#allocation38_spill] sm:$0xff] %v3764_v4  ;;  %2589 = vmatprep.subr.bf16.mxu0 %v4462_v30  ;;  %v3806_v10 = vsub.f32 %v3713_v8, %v4464_v48  ;;  %v4334_v48 = vand.u32 4294901760, %v3768_v56  ;;  %v4480_v30 = vand.u32 4294901760, %v3502_v17 }
  0x7e   : > { %v3801_v63 = vsub.f32 %v3698_v45, %v4463_v11  ;;  %v3811_v33 = vsub.f32 %v3718_v25, %v4465_v31  ;;  %v4467_v45 = vand.u32 4294901760, %v3736_v41  ;;  %2623 = vmatpush3.bf16.msra.mxu1 %v4392_v32  ;;  %v4469_v11 = vand.u32 4294901760, %v3754_v52 }
  0x7f   : > { %2625 = vmatprep.subr.bf16.mxu1 %v4394_v9  ;;  %v4471_v32 = vand.u32 4294901760, %v3384_v7  ;;  %v4472_v31 = vand.u32 4294901760, %v3386_v62  ;;  %v4477_v9 = vand.u32 4294901760, %v3435_v43 }
  0x80   : > { %v3823_v39 = vsub.f32 %v3736_v41, %v4467_v45  ;;  %2591 = vmatpush3.bf16.msra.mxu0 %v3313_v15  ;;  %v3836_v45 = vsub.f32 %v3754_v52, %v4469_v11  ;;  %v1190_v11 = vsub.f32 %v3768_v56, %v4334_v48  ;;  %v4478_v48 = vand.u32 4294901760, %v3466_v58 }
  0x81   : > { %2593 = vmatprep.subr.bf16.mxu0 %v3319_v27  ;;  %v3854_v25 = vpack.c.bf16 %v4472_v31, %v4471_v32  ;;  %v4474_v27 = vand.u32 4294901760, %v3404_v61  ;;  %v4481_v56 = vand.u32 4294901760, %v3517_v20  ;;  %v4483_v32 = vand.u32 4294901760, %v3522_v16 }
  0x82   : > { %4468 = vst [vmem:[#allocation15_spill] sm:$0xff] %v3823_v39  ;;  %4470 = vst [vmem:[#allocation40_spill] sm:$0xff] %v3836_v45  ;;  %2627 = vmatpush3.bf16.msra.mxu1 %v4398_v47  ;;  %v3867_v15 = vpack.c.bf16 %v4478_v48, %v4477_v9  ;;  %v4486_v47 = vand.u32 4294901760, %v3540_v51  ;;  %v4499_v48 = vand.u32 4294901760, %v3705_v53 }
  0x83   : > { %4473 = vst [vmem:[#allocation41_spill] sm:$0xff] %v3854_v25  ;;  %v3860_v40 = vpack.c.bf16 %v4475_v12, %v4474_v27  ;;  %v3873_v31 = vpack.c.bf16 %v4481_v56, %v4480_v30  ;;  %v4484_v25 = vand.u32 4294901760, %v3535_v35  ;;  %v4487_v27 = vand.u32 4294901760, %v3545_v5  ;;  %2629 = vmatprep.subr.bf16.mxu1 %v4399_v59 }
  0x84   : > { %4479 = vst [vmem:[#allocation43_spill] sm:$0xff] %v3867_v15  ;;  %2595 = vmatpush3.bf16.msra.mxu0 %v3326_v29  ;;  %v4489_v56 = vand.u32 4294901760, %v3576_v23  ;;  %v4490_v30 = vand.u32 4294901760, %v3599_v18  ;;  %v4496_v29 = vand.u32 4294901760, %v3657_v6  ;;  %v4498_v59 = vand.u32 4294901760, %v3683_v14  ;;  %v4537_v15 = vld [vmem:[#allocation19_spill] sm:$0xff] }
  0x85   : > { %4476 = vst [vmem:[#allocation42_spill] sm:$0xff] %v3860_v40  ;;  %4482 = vst [vmem:[#allocation44_spill] sm:$0xff] %v3873_v31  ;;  %v3879_v12 = vpack.c.bf16 %v4484_v25, %v4483_v32  ;;  %v3885_v40 = vpack.c.bf16 %v4487_v27, %v4486_v47  ;;  %v4492_v25 = vand.u32 4294901760, %v3610_v54  ;;  %v4493_v32 = vand.u32 4294901760, %v3617_v42  ;;  %2597 = vmatprep.subr.bf16.mxu0 %v3328_v57  ;;  %v4536_v31 = vld [vmem:[#allocation25_spill] sm:$0xff] }
  0x86   : > { %v3894_v9 = vpack.c.bf16 %v4490_v30, %v4489_v56  ;;  %v4495_v47 = vand.u32 4294901760, %v3652_v38  ;;  %v3913_v56 = vpack.c.bf16 %v4499_v48, %v4498_v59  ;;  %v4501_v30 = vand.u32 4294901760, %v3759_v19  ;;  %2631 = vmatpush3.bf16.msra.mxu1 %v4406_v60 }
  0x87   : > { %4485 = vst [vmem:[#allocation45_spill] sm:$0xff] %v3879_v12  ;;  %4488 = vst [vmem:[#allocation46_spill] sm:$0xff] %v3885_v40  ;;  %v3900_v12 = vpack.c.bf16 %v4493_v32, %v4492_v25  ;;  %v4504_v32 = vand.u32 4294901760, %v3774_v37  ;;  %v4507_v57 = vand.u32 4294901760, %v3788_v28  ;;  %v4510_v48 = vand.u32 4294901760, %v3545_v5  ;;  %2665 = vmatprep.subr.bf16.mxu1 %v3571_v46 }
  0x88   : > { %4491 = vst [vmem:[#allocation47_spill] sm:$0xff] %v3894_v9  ;;  %v3906_v27 = vpack.c.bf16 %v4496_v29, %v4495_v47  ;;  %4500 = vst [vmem:[#allocation50_spill] sm:$0xff] %v3913_v56  ;;  %v4502_v9 = vand.u32 4294901760, %v3764_v4  ;;  %v4508_v29 = vand.u32 4294901760, %v3793_v13  ;;  %v4511_v56 = vand.u32 4294901760, %v3801_v63  ;;  %2599 = vmatpush3.bf16.msra.mxu0 %v3330_v44  ;;  %v4526_v44 = vld [vmem:[#allocation3_spill] sm:$0xff] }
  0x89   : > { %4494 = vst [vmem:[#allocation48_spill] sm:$0xff] %v3900_v12  ;;  %v4505_v12 = vand.u32 4294901760, %v3779_v55  ;;  %v1242_v59 = vsub.f32 %v3545_v5, %v4510_v48  ;;  %v1222_v48 = vand.u32 4294901760, %v3622_v0  ;;  %v4523_v0 = vand.u32 4294901760, %v3599_v18  ;;  %2633 = vmatprep.subr.bf16.mxu0 %v3483_v21 }
  0x8a   : > { %4497 = vst [vmem:[#allocation49_spill] sm:$0xff] %v3906_v27  ;;  %v3919_v25 = vpack.c.bf16 %v4502_v9, %v4501_v30  ;;  %v3931_v27 = vpack.c.bf16 %v4508_v29, %v4507_v57  ;;  %v4512_v9 = vand.u32 4294901760, %v3806_v10  ;;  %v4518_v57 = vand.u32 4294901760, %v3836_v45 }
  0x8b   : > { %v3925_v47 = vpack.c.bf16 %v4505_v12, %v4504_v32  ;;  %v4515_v12 = vand.u32 4294901760, %v3816_v3 }
  0x8c   : > { %4503 = vst [vmem:[#allocation51_spill] sm:$0xff] %v3919_v25  ;;  %4509 = vst [vmem:[#allocation53_spill] sm:$0xff] %v3931_v27  ;;  %v3940_v30 = vpack.c.bf16 %v4512_v9, %v4511_v56  ;;  %v4514_v25 = vand.u32 4294901760, %v3811_v33  ;;  %v1229_v27 = vand.u32 4294901760, %v3647_v36  ;;  %v1348_v56 = vand.u32 4294901760, %v3673_v34  ;;  %v4524_v34 = vld [vmem:[#allocation2_spill] sm:$0xff] }
  0x8d   : > { %4506 = vst [vmem:[#allocation52_spill] sm:$0xff] %v3925_v47  ;;  %v4517_v47 = vand.u32 4294901760, %v3823_v39  ;;  %v1355_v9 = vand.u32 4294901760, %v3678_v2  ;;  %v1368_v36 = vsub.f32 %v3599_v18, %v4523_v0  ;;  %v4525_v2 = vand.u32 4294901760, %v4524_v34  ;;  %v4532_v34 = vld [vmem:[#allocation6_spill] sm:$0xff] }
  0x8e   : > { %4513 = vst [vmem:[#allocation54_spill] sm:$0xff] %v3940_v30  ;;  %v3946_v32 = vpack.c.bf16 %v4515_v12, %v4514_v25  ;;  %v4520_v25 = vand.u32 4294901760, %v3562_v26  ;;  %v4521_v12 = vand.u32 4294901760, %v3590_v49  ;;  %v1191_v26 = vand.u32 4294901760, %v1190_v11  ;;  %v4529_v49 = vld [vmem:[#allocation36_spill] sm:$0xff] }
  0x8f   : > { %v3952_v29 = vpack.c.bf16 %v4518_v57, %v4517_v47  ;;  %v4522_v57 = vand.u32 4294901760, %v3576_v23  ;;  %v4531_v0 = vand.u32 4294901760, %v3617_v42  ;;  %v4538_v18 = vand.u32 4294901760, %v3652_v38 }
  0x90   : > { %4516 = vst [vmem:[#allocation55_spill] sm:$0xff] %v3946_v32  ;;  %v2668_v47 = vpack.c.bf16 %v4521_v12, %v4520_v25  ;;  %v4528_v32 = vld [vmem:[#allocation11_spill] sm:$0xff]  ;;  %v1236_v25 = vand.u32 4294901760, %v4529_v49  ;;  %v1243_v12 = vand.u32 4294901760, %v1242_v59  ;;  %v2670_v49 = vpack.c.bf16 %v1229_v27, %v1222_v48 }
  0x91   : > { %4519 = vst [vmem:[#allocation56_spill] sm:$0xff] %v3952_v29  ;;  %v1361_v60 = vsub.f32 %v3576_v23, %v4522_v57  ;;  %v4527_v29 = vand.u32 4294901760, %v4526_v44  ;;  %1086 = vmatmul.mubr.f32.vlgmr.msra.gmra.mrb[4].mxu1 %v4528_v32  ;;  %v4530_v57 = vand.u32 4294901760, %v3610_v54  ;;  %v1256_v40 = vsub.f32 %v3617_v42, %v4531_v0  ;;  %982 = vmatmul.mubr.f32.vlgmr.msra.gmra.mrb[4].mxu0 %v4528_v32 }
  0x92   : > { %v4533_v44 = vand.u32 4294901760, %v4532_v34  ;;  %2667 = vmatpush3.bf16.msra.mxu1 %v4536_v31  ;;  %v2672_v59 = vpack.c.bf16 %v1355_v9, %v1348_v56  ;;  %2635 = vmatpush3.bf16.msra.mxu0 %v4537_v15  ;;  %v1375_v0 = vsub.f32 %v3652_v38, %v4538_v18  ;;  %v4539_v32 = vand.u32 4294901760, %v3657_v6  ;;  %v4542_v31 = vld [vmem:[#allocation5_spill] sm:$0xff] }
  0x93   : > { %v3976_v46 = vpack.c.bf16 %v4527_v29, %v4525_v2  ;;  %v1249_v30 = vsub.f32 %v3610_v54, %v4530_v57  ;;  %v4534_v29 = vld [vmem:[#allocation7_spill] sm:$0xff]  ;;  %2669 = vmatprep.subr.bf16.mxu1 %v2668_v47  ;;  %v1362_v57 = vand.u32 4294901760, %v1361_v60  ;;  %v1369_v54 = vand.u32 4294901760, %v1368_v36  ;;  %1192 = vmatprep.mubr.f32.mxu0 %v1191_v26 }
  0x94   : > { %v4535_v2 = vand.u32 4294901760, %v4534_v29  ;;  %v1382_v34 = vsub.f32 %v3657_v6, %v4539_v32  ;;  %v4543_v27 = vand.u32 4294901760, %v4542_v31  ;;  %v2674_v56 = vpack.c.bf16 %v1243_v12, %v1236_v25  ;;  %1428 = vmatprep.mubr.f32.mxu1 %v3738_v50  ;;  %v4550_v12 = vld [vmem:[#allocation17_spill] sm:$0xff] }
  0x95   : > { %2637 = vmatprep.subr.bf16.mxu0 %v3976_v46  ;;  %v1250_v9 = vand.u32 4294901760, %v1249_v30  ;;  %v1257_v47 = vand.u32 4294901760, %v1256_v40  ;;  %v4544_v18 = vand.u32 4294901760, %v3683_v14  ;;  %v4545_v36 = vand.u32 4294901760, %v3705_v53  ;;  %v4548_v40 = vld [vmem:[#allocation16_spill] sm:$0xff]  ;;  %v4554_v50 = vld [vmem:[#allocation9_spill] sm:$0xff] }
  0x96   : > { %v3991_v11 = vpack.c.bf16 %v4535_v2, %v4533_v44  ;;  %v4540_v44 = vld [vmem:[#allocation4_spill] sm:$0xff]  ;;  %2671 = vmatpush3.bf16.msra.mxu1 %v2670_v49  ;;  %v4546_v32 = vand.u32 4294901760, %v3759_v19  ;;  %v4547_v26 = vand.u32 4294901760, %v3764_v4  ;;  %v4549_v25 = vand.u32 4294901760, %v4548_v40 }
  0x97   : > { %v4541_v29 = vand.u32 4294901760, %v4540_v44  ;;  %v1263_v60 = vsub.f32 %v3683_v14, %v4544_v18  ;;  %v1270_v2 = vsub.f32 %v3705_v53, %v4545_v36  ;;  %v4551_v49 = vand.u32 4294901760, %v4550_v12  ;;  %2673 = vmatprep.subr.bf16.mxu1 %v2672_v59  ;;  %v4552_v36 = vld [vmem:[#allocation8_spill] sm:$0xff] }
  0x98   : > { %v1389_v44 = vsub.f32 %v3759_v19, %v4546_v32  ;;  %v1396_v30 = vsub.f32 %v3764_v4, %v4547_v26  ;;  %2639 = vmatpush3.bf16.msra.mxu0 %v3991_v11  ;;  %v2676_v31 = vpack.c.bf16 %v1369_v54, %v1362_v57  ;;  %v1383_v18 = vand.u32 4294901760, %v1382_v34  ;;  %v4556_v26 = vld [vmem:[#allocation18_spill] sm:$0xff]  ;;  %v4558_v14 = vld [vmem:[#allocation20_spill] sm:$0xff] }
  0x99   : > { %v4006_v48 = vpack.c.bf16 %v4543_v27, %v4541_v29  ;;  %v4026_v29 = vpack.c.bf16 %v4551_v49, %v4549_v25  ;;  %v1376_v27 = vand.u32 4294901760, %v1375_v0  ;;  %v4553_v32 = vand.u32 4294901760, %v4552_v36  ;;  %v4564_v36 = vld [vmem:[#allocation12_spill] sm:$0xff] }
  0x9a   : > { %v4555_v19 = vand.u32 4294901760, %v4554_v50  ;;  %v4557_v4 = vand.u32 4294901760, %v4556_v26  ;;  %v4559_v40 = vand.u32 4294901760, %v4558_v14  ;;  %v2678_v25 = vpack.c.bf16 %v1257_v47, %v1250_v9  ;;  %2675 = vmatpush3.bf16.msra.mxu1 %v2674_v56 }
  0x9b   : > { %2641 = vmatprep.subr.bf16.mxu0 %v4006_v48  ;;  %v4560_v59 = vand.u32 4294901760, %v3774_v37  ;;  %v4561_v57 = vand.u32 4294901760, %v3779_v55  ;;  %v1264_v34 = vand.u32 4294901760, %v1263_v60  ;;  %v1271_v50 = vand.u32 4294901760, %v1270_v2  ;;  %2677 = vmatprep.subr.bf16.mxu1 %v2676_v31  ;;  %v4566_v60 = vld [vmem:[#allocation21_spill] sm:$0xff]  ;;  %v4570_v31 = vld [vmem:[#allocation23_spill] sm:$0xff] }
  0x9c   : > { %v4033_v53 = vpack.c.bf16 %v4555_v19, %v4553_v32  ;;  %v4039_v6 = vpack.c.bf16 %v4559_v40, %v4557_v4  ;;  %v1390_v19 = vand.u32 4294901760, %v1389_v44  ;;  %v1397_v12 = vand.u32 4294901760, %v1396_v30  ;;  %2643 = vmatpush3.bf16.msra.mxu0 %v4026_v29  ;;  %v4568_v30 = vld [vmem:[#allocation22_spill] sm:$0xff] }
  0x9d   : > { %v1277_v54 = vsub.f32 %v3774_v37, %v4560_v59  ;;  %v1284_v0 = vsub.f32 %v3779_v55, %v4561_v57  ;;  %v2680_v14 = vpack.c.bf16 %v1383_v18, %v1376_v27  ;;  %v4562_v4 = vand.u32 4294901760, %v3788_v28  ;;  %v4572_v59 = vld [vmem:[#allocation10_spill] sm:$0xff] }
  0x9e   : > { %v4563_v47 = vand.u32 4294901760, %v3793_v13  ;;  %2645 = vmatprep.subr.bf16.mxu0 %v4033_v53  ;;  %v4565_v56 = vand.u32 4294901760, %v4564_v36  ;;  %v4567_v2 = vand.u32 4294901760, %v4566_v60  ;;  %v4569_v32 = vand.u32 4294901760, %v4568_v30  ;;  %2679 = vmatpush3.bf16.msra.mxu1 %v2678_v25 }
  0x9f   : > { %v1403_v9 = vsub.f32 %v3788_v28, %v4562_v4  ;;  %v4571_v27 = vand.u32 4294901760, %v4570_v31  ;;  %v1278_v26 = vand.u32 4294901760, %v1277_v54  ;;  %v1285_v40 = vand.u32 4294901760, %v1284_v0  ;;  %2681 = vmatprep.subr.bf16.mxu1 %v2680_v14 }
  0xa0   : > { %v1410_v49 = vsub.f32 %v3793_v13, %v4563_v47  ;;  %v4059_v44 = vpack.c.bf16 %v4567_v2, %v4565_v56  ;;  %v4068_v57 = vand.u32 4294901760, %v4572_v59  ;;  %v2682_v4 = vpack.c.bf16 %v1271_v50, %v1264_v34  ;;  %2647 = vmatpush3.bf16.msra.mxu0 %v4039_v6 }
  0xa1   : > { %v4065_v18 = vpack.c.bf16 %v4571_v27, %v4569_v32  ;;  %v2684_v47 = vpack.c.bf16 %v1397_v12, %v1390_v19  ;;  %v4573_v36 = vand.u32 4294901760, %v3801_v63  ;;  %v4574_v56 = vand.u32 4294901760, %v3806_v10  ;;  %v4578_v19 = vld [vmem:[#allocation27_spill] sm:$0xff] }
  0xa2   : > { %v1404_v30 = vand.u32 4294901760, %v1403_v9  ;;  %v1411_v54 = vand.u32 4294901760, %v1410_v49  ;;  %v4575_v0 = vand.u32 4294901760, %v3811_v33  ;;  %v4576_v25 = vand.u32 4294901760, %v3816_v3  ;;  %2649 = vmatprep.subr.bf16.mxu0 %v4059_v44  ;;  %2683 = vmatpush3.bf16.msra.mxu1 %v2682_v4 }
  0xa3   : > { %v1291_v60 = vsub.f32 %v3801_v63, %v4573_v36  ;;  %v1298_v2 = vsub.f32 %v3806_v10, %v4574_v56  ;;  %v4577_v50 = vand.u32 4294901760, %v3628_v22  ;;  %v4579_v12 = vand.u32 4294901760, %v4578_v19  ;;  %2685 = vmatprep.subr.bf16.mxu1 %v2684_v47  ;;  %v4589_v47 = vld [vmem:[#allocation32_spill] sm:$0xff] }
  0xa4   : > { %v1417_v32 = vsub.f32 %v3811_v33, %v4575_v0  ;;  %v1424_v34 = vsub.f32 %v3816_v3, %v4576_v25  ;;  %v2686_v27 = vpack.c.bf16 %v1285_v40, %v1278_v26  ;;  %v4092_v14 = vsub.f32 %v4572_v59, %v4068_v57  ;;  %2651 = vmatpush3.bf16.msra.mxu0 %v4065_v18  ;;  %v4583_v26 = vld [vmem:[#allocation28_spill] sm:$0xff] }
  0xa5   : > { %v4088_v31 = vpack.c.bf16 %v4579_v12, %v4577_v50  ;;  %v1292_v9 = vand.u32 4294901760, %v1291_v60  ;;  %v1299_v49 = vand.u32 4294901760, %v1298_v2  ;;  %v4580_v36 = vand.u32 4294901760, %v3823_v39  ;;  %v4585_v2 = vld [vmem:[#allocation30_spill] sm:$0xff]  ;;  %v4587_v12 = vld [vmem:[#allocation31_spill] sm:$0xff] }
  0xa6   : > { %v4581_v0 = vand.u32 4294901760, %v3836_v45  ;;  %v4582_v25 = vand.u32 4294901760, %v3662_v1  ;;  %v4584_v40 = vand.u32 4294901760, %v4583_v26  ;;  %v2688_v59 = vpack.c.bf16 %v1411_v54, %v1404_v30  ;;  %2687 = vmatpush3.bf16.msra.mxu1 %v2686_v27  ;;  %v4594_v27 = vld [vmem:[#allocation35_spill] sm:$0xff] }
  0xa7   : > { %v1305_v56 = vsub.f32 %v3823_v39, %v4580_v36  ;;  %v1418_v4 = vand.u32 4294901760, %v1417_v32  ;;  %v1425_v60 = vand.u32 4294901760, %v1424_v34  ;;  %2653 = vmatprep.subr.bf16.mxu0 %v4088_v31  ;;  %v4586_v19 = vand.u32 4294901760, %v4585_v2 }
  0xa8   : > { %v1312_v22 = vsub.f32 %v3836_v45, %v4581_v0  ;;  %v4105_v50 = vpack.c.bf16 %v4584_v40, %v4582_v25  ;;  %v4588_v36 = vand.u32 4294901760, %v4587_v12  ;;  %v1195_v0 = vand.u32 4294901760, %v4092_v14  ;;  %2689 = vmatprep.subr.bf16.mxu1 %v2688_v59  ;;  %v4592_v25 = vld [vmem:[#allocation34_spill] sm:$0xff] }
  0xa9   : > { %v2690_v1 = vpack.c.bf16 %v1299_v49, %v1292_v9  ;;  %v1306_v45 = vand.u32 4294901760, %v1305_v56  ;;  %v4590_v30 = vand.u32 4294901760, %v4589_v47  ;;  %v4591_v54 = vand.u32 4294901760, %v3713_v8  ;;  %v4606_v12 = vld [vmem:[#allocation38_spill] sm:$0xff] }
  0xaa   : > { %v4112_v39 = vpack.c.bf16 %v4588_v36, %v4586_v19  ;;  %v1313_v26 = vand.u32 4294901760, %v1312_v22  ;;  %2655 = vmatpush3.bf16.msra.mxu0 %v4105_v50  ;;  %v2692_v34 = vpack.c.bf16 %v1425_v60, %v1418_v4  ;;  %v4593_v40 = vand.u32 4294901760, %v4592_v25 }
  0xab   : > { %v4120_v32 = vpack.c.bf16 %v4591_v54, %v4590_v30  ;;  %v4595_v2 = vand.u32 4294901760, %v4594_v27  ;;  %v1196_v9 = vsub.f32 %v4092_v14, %v1195_v0  ;;  %2691 = vmatpush3.bf16.msra.mxu1 %v2690_v1  ;;  %v4596_v8 = vand.u32 4294901760, %v3736_v41 }
  0xac   : > { %2657 = vmatprep.subr.bf16.mxu0 %v4112_v39  ;;  %v2694_v49 = vpack.c.bf16 %v1313_v26, %v1306_v45  ;;  %v4597_v56 = vand.u32 4294901760, %v3754_v52  ;;  %2693 = vmatprep.subr.bf16.mxu1 %v2692_v34  ;;  %v2696_v59 = vpack.c.bf16 %v3386_v62, %v3384_v7  ;;  %v2698_v45 = vpack.c.bf16 %v3407_v24, %v3404_v61  ;;  %v4598_v61 = vld [vmem:[#allocation39_spill] sm:$0xff] }
  0xad   : > { %v4127_v19 = vpack.c.bf16 %v4595_v2, %v4593_v40  ;;  %v1197_v4 = vand.u32 4294901760, %v1196_v9  ;;  %v2700_v41 = vpack.c.bf16 %v3466_v58, %v3435_v43  ;;  %v2702_v7 = vpack.c.bf16 %v3517_v20, %v3502_v17  ;;  %v4600_v58 = vld [vmem:[#allocation24_spill] sm:$0xff]  ;;  %v4601_v20 = vld [vmem:[#allocation26_spill] sm:$0xff] }
  0xae   : > { %2659 = vmatpush3.bf16.msra.mxu0 %v4120_v32  ;;  %v4137_v22 = vpack.c.bf16 %v4597_v56, %v4596_v8  ;;  %v2704_v62 = vpack.c.bf16 %v3535_v35, %v3522_v16  ;;  %v4599_v24 = vand.u32 4294901760, %v4598_v61  ;;  %v2706_v43 = vpack.c.bf16 %v3545_v5, %v3540_v51  ;;  %v4602_v35 = vld [vmem:[#allocation13_spill] sm:$0xff] }
  0xaf   : > { %2661 = vmatprep.subr.bf16.mxu0 %v4127_v19  ;;  %2695 = vmatpush3.bf16.msra.mxu1 %v2694_v49  ;;  %v2708_v17 = vpack.c.bf16 %v4600_v58, %v3576_v23  ;;  %v2710_v16 = vpack.c.bf16 %v3617_v42, %v4601_v20  ;;  %v2712_v52 = vpack.c.bf16 %v4602_v35, %v3652_v38  ;;  %v4603_v5 = vld [vmem:[#allocation29_spill] sm:$0xff]  ;;  %v4605_v23 = vld [vmem:[#allocation14_spill] sm:$0xff]  ;;  %v2844_v49 = vmov 0.0  }
  0xb0   : > { %2729 = vmatprep.subr.bf16.mxu1 %v3483_v21  ;;  %v4604_v51 = vld [vmem:[#allocation33_spill] sm:$0xff]  ;;  %v2716_v36 = vpack.c.bf16 %v4606_v12, %v4605_v23  ;;  %v2718_v42 = vpack.c.bf16 %v3779_v55, %v3774_v37  ;;  %v2720_v38 = vpack.c.bf16 %v3793_v13, %v3788_v28  ;;  %v2722_v1 = vpack.c.bf16 %v3806_v10, %v3801_v63  ;;  %v4607_v55 = vld [vmem:[#allocation15_spill] sm:$0xff]  ;;  %v4608_v37 = vld [vmem:[#allocation40_spill] sm:$0xff] }
  0xb1   : > { %v2714_v60 = vpack.c.bf16 %v4604_v51, %v4603_v5  ;;  %v2724_v26 = vpack.c.bf16 %v3816_v3, %v3811_v33  ;;  %v2726_v47 = vpack.c.bf16 %v4608_v37, %v4607_v55  ;;  %v4609_v13 = vld [vmem:[#allocation41_spill] sm:$0xff]  ;;  %v4610_v3 = vld [vmem:[#allocation42_spill] sm:$0xff]  ;;  %v4611_v28 = vld [vmem:[#allocation43_spill] sm:$0xff]  ;;  %1953 = vst [vmem:[%s4236_s17] sm:$0x1] %v2844_v49 }
  0xb2   : > { %2663 = vmatpush3.bf16.msra.mxu0 %v4137_v22  ;;  %1430 = vmatmul.mubr.f32.vlgmr.msra.gmra.mrb[6].mxu1 %v4068_v57  ;;  %v4612_v63 = vld [vmem:[#allocation37_spill] sm:$0xff]  ;;  %v4615_v33 = vld [vmem:[#allocation46_spill] sm:$0xff]  ;;  %1954 = vst [vmem:[%s4236_s17 + $0x3] sm:$0x1] %v2844_v49 }
  0xb3   : > { %2697 = vmatprep.subr.bf16.mxu0 %v2696_v59  ;;  %2731 = vmatpush3.bf16.msra.mxu1 %v4537_v15  ;;  %v4614_v10 = vld [vmem:[#allocation45_spill] sm:$0xff] }
  0xb4   : > { %2733 = vmatprep.subr.bf16.mxu1 %v3976_v46  ;;  %1672 = vmatprep.mubr.f32.mxu1 %v4599_v24 }
  0xb5   : > { %1198 = vmatmul.mubr.f32.vlgmr.msra.gmra.mrb[6].mxu0 %v1197_v4 }
  0xb6   : > { %2699 = vmatpush3.bf16.msra.mxu0 %v2698_v45  ;;  %1565 = vmatprep.mubr.f32.mxu0 %v4598_v61 }
  0xb7   : > { %2701 = vmatprep.subr.bf16.mxu0 %v2700_v41  ;;  %2735 = vmatpush3.bf16.msra.mxu1 %v3991_v11 }
  0xb8   : > { %2737 = vmatprep.subr.bf16.mxu1 %v4006_v48 }
  0xba   : > { %2703 = vmatpush3.bf16.msra.mxu0 %v2702_v7 }
  0xbb   : > { %2705 = vmatprep.subr.bf16.mxu0 %v2704_v62  ;;  %2739 = vmatpush3.bf16.msra.mxu1 %v4026_v29 }
  0xbc   : > { %2741 = vmatprep.subr.bf16.mxu1 %v4033_v53 }
  0xbe   : > { %2707 = vmatpush3.bf16.msra.mxu0 %v2706_v43 }
  0xbf   : > { %2709 = vmatprep.subr.bf16.mxu0 %v2708_v17  ;;  %2743 = vmatpush3.bf16.msra.mxu1 %v4039_v6 }
  0xc0   : > { %2745 = vmatprep.subr.bf16.mxu1 %v4059_v44 }
  0xc2   : > { %2711 = vmatpush3.bf16.msra.mxu0 %v2710_v16 }
  0xc3   : > { %2713 = vmatprep.subr.bf16.mxu0 %v2712_v52  ;;  %2747 = vmatpush3.bf16.msra.mxu1 %v4065_v18 }
  0xc4   : > { %2749 = vmatprep.subr.bf16.mxu1 %v4088_v31 }
  0xc6   : > { %2715 = vmatpush3.bf16.msra.mxu0 %v2714_v60 }
  0xc7   : > { %2717 = vmatprep.subr.bf16.mxu0 %v2716_v36  ;;  %2751 = vmatpush3.bf16.msra.mxu1 %v4105_v50 }
  0xc8   : > { %2753 = vmatprep.subr.bf16.mxu1 %v4112_v39 }
  0xca   : > { %2719 = vmatpush3.bf16.msra.mxu0 %v2718_v42 }
  0xcb   : > { %2721 = vmatprep.subr.bf16.mxu0 %v2720_v38  ;;  %2755 = vmatpush3.bf16.msra.mxu1 %v4120_v32 }
  0xcc   : > { %2757 = vmatprep.subr.bf16.mxu1 %v4127_v19 }
  0xce   : > { %2723 = vmatpush3.bf16.msra.mxu0 %v2722_v1 }
  0xcf   : > { %2725 = vmatprep.subr.bf16.mxu0 %v2724_v26  ;;  %2759 = vmatpush3.bf16.msra.mxu1 %v4137_v22 }
  0xd0   : > { %2793 = vmatprep.subr.bf16.mxu1 %v3483_v21  ;;  %v4613_v21 = vld [vmem:[#allocation44_spill] sm:$0xff] }
  0xd2   : > { %2727 = vmatpush3.bf16.msra.mxu0 %v2726_v47  ;;  %1676 = vmatmul.mubr.f32.vlgmr.msra.gmra.mrb[8].mxu1 %v1195_v0 }
  0xd3   : > { %2761 = vmatprep.subr.bf16.mxu0 %v4609_v13  ;;  %2795 = vmatpush3.bf16.msra.mxu1 %v4537_v15  ;;  %v4616_v15 = vld [vmem:[#allocation47_spill] sm:$0xff] }
  0xd4   : > { %2797 = vmatprep.subr.bf16.mxu1 %v3976_v46  ;;  %1946 = vmatprep.mubr.f32.mxu1 %v4612_v63  ;;  %v4617_v46 = vld [vmem:[#allocation48_spill] sm:$0xff] }
  0xd5   : > { %1568 = vmatmul.mubr.f32.vlgmr.msra.gmra.mrb[8].mxu0 %v4092_v14 }
  0xd6   : > { %2763 = vmatpush3.bf16.msra.mxu0 %v4610_v3  ;;  %1842 = vmatprep.mubr.f32.mxu0 %v4612_v63 }
  0xd7   : > { %2765 = vmatprep.subr.bf16.mxu0 %v4611_v28  ;;  %2799 = vmatpush3.bf16.msra.mxu1 %v3991_v11  ;;  %v4618_v11 = vld [vmem:[#allocation49_spill] sm:$0xff] }
  0xd8   : > { %2801 = vmatprep.subr.bf16.mxu1 %v4006_v48  ;;  %v4619_v48 = vld [vmem:[#allocation50_spill] sm:$0xff] }
  0xda   : > { %2767 = vmatpush3.bf16.msra.mxu0 %v4613_v21 }
  0xdb   : > { %2769 = vmatprep.subr.bf16.mxu0 %v4614_v10  ;;  %2803 = vmatpush3.bf16.msra.mxu1 %v4026_v29  ;;  %v4620_v29 = vld [vmem:[#allocation51_spill] sm:$0xff] }
  0xdc   : > { %2805 = vmatprep.subr.bf16.mxu1 %v4033_v53  ;;  %v4621_v53 = vld [vmem:[#allocation52_spill] sm:$0xff] }
  0xde   : > { %2771 = vmatpush3.bf16.msra.mxu0 %v4615_v33 }
  0xdf   : > { %2773 = vmatprep.subr.bf16.mxu0 %v4616_v15  ;;  %2807 = vmatpush3.bf16.msra.mxu1 %v4039_v6  ;;  %v4622_v6 = vld [vmem:[#allocation53_spill] sm:$0xff] }
  0xe0   : > { %2809 = vmatprep.subr.bf16.mxu1 %v4059_v44  ;;  %v4623_v44 = vld [vmem:[#allocation54_spill] sm:$0xff] }
  0xe2   : > { %2775 = vmatpush3.bf16.msra.mxu0 %v4617_v46 }
  0xe3   : > { %2777 = vmatprep.subr.bf16.mxu0 %v4618_v11  ;;  %2811 = vmatpush3.bf16.msra.mxu1 %v4065_v18  ;;  %v4624_v18 = vld [vmem:[#allocation55_spill] sm:$0xff] }
  0xe4   : > { %2813 = vmatprep.subr.bf16.mxu1 %v4088_v31  ;;  %v4625_v31 = vld [vmem:[#allocation56_spill] sm:$0xff] }
  0xe6   : > { %2779 = vmatpush3.bf16.msra.mxu0 %v4619_v48 }
  0xe7   : > { %2781 = vmatprep.subr.bf16.mxu0 %v4620_v29  ;;  %2815 = vmatpush3.bf16.msra.mxu1 %v4105_v50 }
  0xe8   : > { %2817 = vmatprep.subr.bf16.mxu1 %v4112_v39 }
  0xea   : > { %2783 = vmatpush3.bf16.msra.mxu0 %v4621_v53 }
  0xeb   : > { %2785 = vmatprep.subr.bf16.mxu0 %v4622_v6  ;;  %2819 = vmatpush3.bf16.msra.mxu1 %v4120_v32 }
  0xec   : > { %2821 = vmatprep.subr.bf16.mxu1 %v4127_v19 }
  0xee   : > { %2787 = vmatpush3.bf16.msra.mxu0 %v4623_v44 }
  0xef   : > { %2789 = vmatprep.subr.bf16.mxu0 %v4624_v18  ;;  %2823 = vmatpush3.bf16.msra.mxu1 %v4137_v22 }
  0xf2   : > { %2791 = vmatpush3.bf16.msra.mxu0 %v4625_v31  ;;  %1948 = vmatmul.mubr.f32.vlgmr.msra.gmra.mrb[10].mxu1 %v4068_v57 }
  0xf5   : > { %1844 = vmatmul.mubr.f32.vlgmr.msra.gmra.mrb[10].mxu0 %v4068_v57 }
 0x11b   : > { %v2087_v39 = vpop.f32.mrb[0].mxu1 }
 0x11c   : > { %v2088_v50 = vpop.f32.mrb[1].mxu1 }
 0x11d   : > { %v2089_v30 = vadd.f32 %v2088_v50, %v2087_v39 }
 0x11e   : > { %v2052_v14 = vpop.f32.mrb[0].mxu0 }
 0x11f   : > { %v2053_v0 = vpop.f32.mrb[1].mxu0 }
 0x120   : > { %v2054_v54 = vadd.f32 %v2053_v0, %v2052_v14 }
 0x122   : > { %v570_v32 = vadd.f32 %v2089_v30, %v2054_v54 }
 0x13c   : > { %v2157_v34 = vpop.f32.mrb[2].mxu1 }
 0x13d   : > { %v2158_v40 = vpop.f32.mrb[3].mxu1 }
 0x13e   : > { %v2122_v25 = vpop.f32.mrb[2].mxu0  ;;  %v2159_v2 = vadd.f32 %v2158_v40, %v2157_v34 }
 0x13f   : > { %v2123_v27 = vpop.f32.mrb[3].mxu0 }
 0x140   : > { %v2124_v19 = vadd.f32 %v2123_v27, %v2122_v25 }
 0x142   : > { %v708_v9 = vadd.f32 %v2124_v19, %v570_v32 }
 0x144   : > { %v816_v57 = vadd.f32 %v2159_v2, %v708_v9 }
 0x164   : > { %v2227_v8 = vpop.f32.mrb[4].mxu1  ;;  %v2192_v56 = vpop.f32.mrb[4].mxu0 }
 0x165   : > { %v2228_v22 = vpop.f32.mrb[5].mxu1  ;;  %v2193_v59 = vpop.f32.mrb[5].mxu0 }
 0x166   : > { %v2229_v4 = vadd.f32 %v2228_v22, %v2227_v8  ;;  %v2194_v45 = vadd.f32 %v2193_v59, %v2192_v56 }
 0x168   : > { %v984_v41 = vadd.f32 %v2194_v45, %v816_v57 }
 0x16a   : > { %v1088_v7 = vadd.f32 %v2229_v4, %v984_v41 }
 0x185   : > { %v2297_v62 = vpop.f32.mrb[6].mxu1 }
 0x186   : > { %v2298_v24 = vpop.f32.mrb[7].mxu1 }
 0x187   : > { %v2299_v58 = vadd.f32 %v2298_v24, %v2297_v62 }
 0x188   : > { %v2262_v61 = vpop.f32.mrb[6].mxu0 }
 0x189   : > { %v2263_v43 = vpop.f32.mrb[7].mxu0 }
 0x18a   : > { %v2264_v17 = vadd.f32 %v2263_v43, %v2262_v61 }
 0x18c   : > { %v1200_v20 = vadd.f32 %v2264_v17, %v1088_v7 }
 0x18e   : > { %v1432_v16 = vadd.f32 %v2299_v58, %v1200_v20 }
 0x1a5   : > { %v2367_v35 = vpop.f32.mrb[8].mxu1 }
 0x1a6   : > { %v2368_v5 = vpop.f32.mrb[9].mxu1 }
 0x1a7   : > { %v2369_v60 = vadd.f32 %v2368_v5, %v2367_v35 }
 0x1a8   : > { %v2332_v52 = vpop.f32.mrb[8].mxu0 }
 0x1a9   : > { %v2333_v51 = vpop.f32.mrb[9].mxu0 }
 0x1aa   : > { %v2334_v23 = vadd.f32 %v2333_v51, %v2332_v52 }
 0x1ac   : > { %v1570_v12 = vadd.f32 %v2334_v23, %v1432_v16 }
 0x1ae   : > { %v1678_v36 = vadd.f32 %v2369_v60, %v1570_v12 }
 0x1c5   : > { %v2437_v42 = vpop.f32.mrb[10].mxu1 }
 0x1c6   : > { %v2438_v1 = vpop.f32.mrb[11].mxu1 }
 0x1c7   : > { %v2439_v55 = vadd.f32 %v2438_v1, %v2437_v42 }
 0x1c8   : > { %v2402_v38 = vpop.f32.mrb[10].mxu0 }
 0x1c9   : > { %v2403_v26 = vpop.f32.mrb[11].mxu0 }
 0x1ca   : > { %v2404_v37 = vadd.f32 %v2403_v26, %v2402_v38 }
 0x1cc   : > { %v1846_v47 = vadd.f32 %v2404_v37, %v1678_v36 }
 0x1ce   : > { %v1950_v13 = vadd.f32 %v2439_v55, %v1846_v47 }
 0x1d0   : > { %1955 = vst [vmem:[%s4236_s17 + $0x1] sm:$0x3] %v1950_v13 }
 0x1d1 PF: > { %s12_s9 = sadd.s32 1, %s2841_s9  }
 0x1d2   : > { %p9_p4 = scmp.ge.s32.totalorder %s12_s9, 4  }
 0x1d4   :  { %11 = sbr.rel (!%p9_p4) target bundleno = 1 (0x1), region = 58 }

</bundles_post_ra>
